<compile_context>
chip_gen: v7x
topology: tpu7x:2x2x1
jax: 0.10.0
libtpu: 0.0.40
codegen_flags: <defaults>
</compile_context>

<pallas_src>
import jax
import jax.numpy as jnp
from jax.experimental import pallas as pl
from jax.experimental.pallas import tpu as pltpu


def _round_up(a: int, b: int) -> int:
    return (a + b - 1) // b * b


def _cdiv(a: int, b: int) -> int:
    return -(-a // b)


def _eup_dtype():
    """bf16 transcendentals are ~2x on the v6e/v7x EUP; older chips keep f32."""
    try:
        kind = jax.devices()[0].device_kind.lower()
    except Exception:
        return jnp.float32
    return jnp.bfloat16 if ("v6" in kind or "v7" in kind) else jnp.float32


_VMEM_TILE_BUDGET = 40 << 20  # leaves headroom inside v7x's 64 MiB physical VMEM


def _vmem_estimate(tb: int, n: int, d: int, dp: int, weight_buffers: int = 2) -> int:
    """Rough per-kernel VMEM footprint (bytes): pipelined tiles + temporaries."""
    n8 = _round_up(n, 8)
    lane_d = max(d, 128)
    x_tile = 2 * tb * n8 * lane_d * 2          # bf16 x tile, double-buffered, lane-padded
    m_tile = 2 * tb * n8 * 128 * 4             # (TB, N, 1) f32 mask, lane-padded
    out_tile = 2 * tb * dp * 4                 # f32 out tile, double-buffered
    interm = tb * n8 * (dp + lane_d) * 4       # proj + f32 x copy (upper bound)
    weights = weight_buffers * (2 * (2 * d * dp + dp * dp) + 16 * dp)
    return x_tile + m_tile + out_tile + interm + weights


def _pick_batch_tile(b: int, n: int, d: int, dp: int) -> int:
    tb = min(512, _round_up(b, 8))
    if b >= 16:
        # keep >= 2 grid tiles so both v7x TensorCores get work via "parallel"
        tb = min(tb, _round_up(_cdiv(b, 2), 8))
    while tb > 8 and _vmem_estimate(tb, n, d, dp) > _VMEM_TILE_BUDGET:
        tb -= 8
    # Balance tiles so a batch just over a multiple of TB (e.g. B=130, TB=128)
    # doesn't spend a nearly-empty extra tile.
    tb = max(8, _round_up(_cdiv(b, _cdiv(b, tb)), 8))
    return tb


def _make_kernel(tanh_dtype, b_total):
    def kernel(x_ref, m_ref, wq_ref, bq_ref, v_ref,
               w1_ref, b1_ref, w2_ref, b2_ref, o_ref):
        TB, N, D = x_ref.shape
        x = x_ref[...]                                   # (TB, N, D) bf16, native layout
        m = m_ref[...]                                   # (TB, N, 1) f32

        # NOTE: dropout is the identity at inference; `att` is None in this config.

        # ---- additive-attention pooler -------------------------------------
        # Projection as a plain 2-D MXU matmul on a 2-D *view* of the tile.
        # When N % 8 == 0 (pad/choose history length upstream) this reshape is a
        # pure relabeling of the (sublane, lane) tiling -> no VMEM copy.
        x2 = x.reshape(TB * N, D)
        proj = jnp.dot(x2, wq_ref[...], preferred_element_type=jnp.float32)
        proj = jnp.tanh((proj + bq_ref[...]).astype(tanh_dtype))        # (TB*N, Dp)

        # score = <v, proj>: VPU multiply + lane reduction; only the tiny
        # 1-lane-wide score vector is regrouped to (TB, N, 1), so the whole
        # softmax runs with N on sublanes (x's native layout).
        scores = jnp.sum(proj.astype(jnp.float32) * v_ref[...],
                         axis=-1, keepdims=True)                        # (TB*N, 1)
        scores = scores.reshape(TB, N, 1)

        # Masked softmax over N. (Reference masks *after* softmax without
        # renormalizing; with -1e9 logits both are numerically identical.)
        valid = m > 0.0
        scores = jnp.where(valid, scores, -1e9)
        scores = scores - jnp.max(scores, axis=1, keepdims=True)
        e = jnp.where(valid, jnp.exp(scores), 0.0)                      # (TB, N, 1)
        # Guard fully-masked rows (incl. ragged-tile garbage rows).
        denom = jnp.maximum(jnp.sum(e, axis=1, keepdims=True), 1e-20)
        a = e * pl.reciprocal(denom, approx=True)                       # (TB, N, 1)

        pooled = jnp.sum(a * x.astype(jnp.float32), axis=1)             # (TB, D) f32

        # ---- head: Linear -> ReLU -> Linear (Dp-padded -> lane-dense) ------
        h = jnp.dot(pooled.astype(jnp.bfloat16), w1_ref[...],
                    preferred_element_type=jnp.float32) + b1_ref[...]
        h = jnp.maximum(h, 0.0)
        out = jnp.dot(h.astype(jnp.bfloat16), w2_ref[...],
                      preferred_element_type=jnp.float32) + b2_ref[...]

        # Zero rows past the true batch (ragged last tile) so the tile-aligned
        # output buffer is deterministic; the wrapper slices [:B, :D].
        row = pl.program_id(0) * TB + jax.lax.broadcasted_iota(jnp.int32, (TB, 1), 0)
        out = jnp.where(row < b_total, out, 0.0)
        o_ref[...] = out.astype(o_ref.dtype)                            # (TB, Dp)
    return kernel


def user_encoder(x, m, params, *, batch_tile=None):
    """x: (B, N, D), m: (B, N, 1) or (B, N) -> (B, D) (dtype of x)."""
    B, N, D = x.shape
    out_dtype = x.dtype
    wq, bq, v, w1, b1, w2, b2 = params

    if m.ndim == 2:
        m = m[..., None]
    m = m.astype(jnp.float32)

    # bf16 activations: halves the dominant HBM stream and feeds the MXU
    # natively (ideally x already arrives as bf16 so this cast is a no-op).
    x_bf16 = x.astype(jnp.bfloat16)

    # Lane-dense weights: zero-pad every output dim to Dp = round_up(D, 128);
    # padded columns stay exactly 0 through tanh / v / ReLU, so results match.
    Dp = _round_up(max(D, 128), 128)
    pad = Dp - D
    wq_p = jnp.pad(wq, ((0, 0), (0, pad))).astype(jnp.bfloat16)            # (D, Dp)
    bq_p = jnp.pad(bq.reshape(1, -1), ((0, 0), (0, pad))).astype(jnp.float32)
    v_p = jnp.pad(v.reshape(1, -1), ((0, 0), (0, pad))).astype(jnp.float32)
    w1_p = jnp.pad(w1, ((0, 0), (0, pad))).astype(jnp.bfloat16)            # (D, Dp)
    b1_p = jnp.pad(b1.reshape(1, -1), ((0, 0), (0, pad))).astype(jnp.float32)
    w2_p = jnp.pad(w2, ((0, pad), (0, pad))).astype(jnp.bfloat16)          # (Dp, Dp)
    b2_p = jnp.pad(b2.reshape(1, -1), ((0, 0), (0, pad))).astype(jnp.float32)

    if batch_tile is None:
        TB = _pick_batch_tile(B, N, D, Dp)
    else:
        TB = max(8, _round_up(batch_tile, 8))
    num_tiles = _cdiv(B, TB)

    est = _vmem_estimate(TB, N, D, Dp)
    vmem_limit = int(min(60 << 20, max(32 << 20, 2 * est)))

    kernel = _make_kernel(_eup_dtype(), B)

    def call(single_buffer_weights: bool):
        def const_spec(shape):
            index_map = lambda b, _s=shape: (0,) * len(_s)
            if single_buffer_weights:
                # Constant blocks never change -> single buffer (saves VMEM,
                # matters most on v7x's 64 MiB).
                return pl.BlockSpec(shape, index_map, pipeline_mode=pl.Buffered(1))
            return pl.BlockSpec(shape, index_map)

        return pl.pallas_call(
            kernel,
            out_shape=jax.ShapeDtypeStruct((num_tiles * TB, Dp), out_dtype),
            grid_spec=pltpu.PrefetchScalarGridSpec(
                num_scalar_prefetch=0,
                grid=(num_tiles,),
                in_specs=[
                    pl.BlockSpec((TB, N, D), lambda b: (b, 0, 0)),   # x (bf16)
                    pl.BlockSpec((TB, N, 1), lambda b: (b, 0, 0)),   # mask (f32)
                    const_spec((D, Dp)),                             # wq
                    const_spec((1, Dp)),                             # bq
                    const_spec((1, Dp)),                             # v (row)
                    const_spec((D, Dp)),                             # w1
                    const_spec((1, Dp)),                             # b1
                    const_spec((Dp, Dp)),                            # w2
                    const_spec((1, Dp)),                             # b2
                ],
                out_specs=pl.BlockSpec((TB, Dp), lambda b: (b, 0)),
            ),
            compiler_params=pltpu.CompilerParams(
                dimension_semantics=("parallel",),
                vmem_limit_bytes=vmem_limit),
        )(x_bf16, m, wq_p, bq_p, v_p, w1_p, b1_p, w2_p, b2_p)

    try:
        out_padded = call(single_buffer_weights=True)
    except Exception:
        # pipeline_mode / pl.Buffered(1) not available on this jax version ->
        # fall back to default double-buffered weight blocks.
        out_padded = call(single_buffer_weights=False)

    return out_padded[:B, :D]


def user_encoder_ref(x, m, params):
    """Pure-JAX f32 reference with the module's semantics (m: (B, N, 1))."""
    wq, bq, v, w1, b1, w2, b2 = params
    proj = jnp.tanh(jnp.einsum('bnd,de->bne', x, wq) + bq.reshape(1, 1, -1))
    scores = jnp.einsum('bnd,do->bno', proj, v)              # (B, N, 1)
    scores = jnp.where(m > 0, scores, -1e9)
    a = jax.nn.softmax(scores, axis=1)
    a = jnp.where(m > 0, a, 0.0)
    pooled = jnp.sum(a * x, axis=1)                          # (B, D)
    h = jnp.maximum(pooled @ w1 + b1.reshape(1, -1), 0.0)
    return h @ w2 + b2.reshape(1, -1)


def init_params(key, emb_dim):
    ks = jax.random.split(key, 7)
    scale = 1.0 / jnp.sqrt(emb_dim)
    wq = jax.random.normal(ks[0], (emb_dim, emb_dim), jnp.float32) * scale
    bq = jax.random.normal(ks[1], (1, emb_dim), jnp.float32) * 0.01
    v = jax.random.normal(ks[2], (emb_dim, 1), jnp.float32) * scale
    w1 = jax.random.normal(ks[3], (emb_dim, emb_dim), jnp.float32) * scale
    b1 = jax.random.normal(ks[4], (1, emb_dim), jnp.float32) * 0.01
    w2 = jax.random.normal(ks[5], (emb_dim, emb_dim), jnp.float32) * scale
    b2 = jax.random.normal(ks[6], (1, emb_dim), jnp.float32) * 0.01
    return (wq, bq, v, w1, b1, w2, b2)


if __name__ == "__main__":
    # Small but representative: B not a tile multiple (exercises the ragged
    # last tile, no wrapper-side padding of x), N a multiple of 8.
    B, N, D = 13, 8, 32

    key = jax.random.PRNGKey(0)
    k_x, k_len, k_p = jax.random.split(key, 3)

    x = jax.random.normal(k_x, (B, N, D), jnp.float32)
    # Variable-length histories, each with at least one valid entry.
    lengths = jax.random.randint(k_len, (B,), 1, N + 1)
    m = (jnp.arange(N)[None, :] < lengths[:, None]).astype(jnp.float32)[..., None]

    params = init_params(k_p, D)

    out = user_encoder(x, m, params, batch_tile=8)   # grid=(2,), ragged last tile
    jax.block_until_ready(out)

    assert out.shape == (B, D) and out.dtype == jnp.float32
    assert bool(jnp.all(jnp.isfinite(out)))

    ref = user_encoder_ref(x, m, params)
    err = float(jnp.max(jnp.abs(out - ref)))
    # bf16 matmul operands / bf16 tanh -> slightly looser tolerance than f32.
    assert bool(jnp.allclose(out, ref, rtol=3e-2, atol=3e-2)), err
    print("KERNEL_OK")
</pallas_src>

<mosaic_0001>
module attributes {stable_mosaic.version = 11 : i64} {
  func.func @kernel(%arg0: i32, %arg1: memref<8x8x32xbf16, #tpu.memory_space<vmem>>, %arg2: memref<8x8x1xf32, #tpu.memory_space<vmem>>, %arg3: memref<32x128xbf16, #tpu.memory_space<vmem>>, %arg4: memref<1x128xf32, #tpu.memory_space<vmem>>, %arg5: memref<1x128xf32, #tpu.memory_space<vmem>>, %arg6: memref<32x128xbf16, #tpu.memory_space<vmem>>, %arg7: memref<1x128xf32, #tpu.memory_space<vmem>>, %arg8: memref<128x128xbf16, #tpu.memory_space<vmem>>, %arg9: memref<1x128xf32, #tpu.memory_space<vmem>>, %arg10: memref<8x128xf32, #tpu.memory_space<vmem>>) attributes {dimension_semantics = [#tpu.dimension_semantics<parallel>], iteration_bounds = array<i64: 2>, scalar_prefetch = 0 : i64, scratch_operands = 0 : i64, tpu.core_type = #tpu.core_type<tc>, window_params = [{transform_indices = @transform_0, window_bounds = array<i64: 8, 8, 32>}, {transform_indices = @transform_1, window_bounds = array<i64: 8, 8, 1>}, {pipeline_mode = #tpu.pipeline_mode<synchronous>, transform_indices = @transform_2, window_bounds = array<i64: 32, 128>}, {pipeline_mode = #tpu.pipeline_mode<synchronous>, transform_indices = @transform_3, window_bounds = array<i64: 1, 128>}, {pipeline_mode = #tpu.pipeline_mode<synchronous>, transform_indices = @transform_4, window_bounds = array<i64: 1, 128>}, {pipeline_mode = #tpu.pipeline_mode<synchronous>, transform_indices = @transform_5, window_bounds = array<i64: 32, 128>}, {pipeline_mode = #tpu.pipeline_mode<synchronous>, transform_indices = @transform_6, window_bounds = array<i64: 1, 128>}, {pipeline_mode = #tpu.pipeline_mode<synchronous>, transform_indices = @transform_7, window_bounds = array<i64: 128, 128>}, {pipeline_mode = #tpu.pipeline_mode<synchronous>, transform_indices = @transform_8, window_bounds = array<i64: 1, 128>}, {transform_indices = @transform_9, window_bounds = array<i64: 8, 128>}]} {
    %c0 = arith.constant 0 : index
    %c0_0 = arith.constant 0 : index
    %c0_1 = arith.constant 0 : index
    %0 = vector.load %arg1[%c0, %c0_0, %c0_1] : memref<8x8x32xbf16, #tpu.memory_space<vmem>>, vector<8x8x32xbf16>
    %c0_2 = arith.constant 0 : index
    %c0_3 = arith.constant 0 : index
    %c0_4 = arith.constant 0 : index
    %1 = vector.load %arg2[%c0_2, %c0_3, %c0_4] : memref<8x8x1xf32, #tpu.memory_space<vmem>>, vector<8x8x1xf32>
    %2 = vector.shape_cast %0 : vector<8x8x32xbf16> to vector<64x32xbf16>
    %c0_5 = arith.constant 0 : index
    %c0_6 = arith.constant 0 : index
    %3 = vector.load %arg3[%c0_5, %c0_6] : memref<32x128xbf16, #tpu.memory_space<vmem>>, vector<32x128xbf16>
    %cst = arith.constant dense<0.000000e+00> : vector<64x128xf32>
    %4 = tpu.matmul %2, %3, %cst {dimension_numbers = #tpu.dot_dimension_numbers<[1], [0], [0], [1], [0, 0, 1, 1], [], []>} : vector<64x32xbf16>, vector<32x128xbf16>, vector<64x128xf32> -> vector<64x128xf32>
    %c0_7 = arith.constant 0 : index
    %c0_8 = arith.constant 0 : index
    %5 = vector.load %arg4[%c0_7, %c0_8] : memref<1x128xf32, #tpu.memory_space<vmem>>, vector<1x128xf32>
    %6 = vector.broadcast %5 : vector<1x128xf32> to vector<64x128xf32>
    %7 = arith.addf %4, %6 : vector<64x128xf32>
    %8 = math.tanh %7 : vector<64x128xf32>
    %c0_9 = arith.constant 0 : index
    %c0_10 = arith.constant 0 : index
    %9 = vector.load %arg5[%c0_9, %c0_10] : memref<1x128xf32, #tpu.memory_space<vmem>>, vector<1x128xf32>
    %10 = vector.broadcast %9 : vector<1x128xf32> to vector<64x128xf32>
    %11 = arith.mulf %8, %10 : vector<64x128xf32>
    %cst_11 = arith.constant dense<0.000000e+00> : vector<64xf32>
    %12 = vector.multi_reduction <add>, %11, %cst_11 [1] : vector<64x128xf32> to vector<64xf32>
    %13 = vector.shape_cast %12 : vector<64xf32> to vector<64x1xf32>
    %14 = vector.shape_cast %13 : vector<64x1xf32> to vector<8x8x1xf32>
    %cst_12 = arith.constant 0.000000e+00 : f32
    %15 = vector.broadcast %cst_12 : f32 to vector<8x8x1xf32>
    %16 = arith.cmpf ogt, %1, %15 : vector<8x8x1xf32>
    %cst_13 = arith.constant -1.000000e+09 : f32
    %17 = vector.broadcast %cst_13 : f32 to vector<8x8x1xf32>
    %18 = arith.select %16, %14, %17 : vector<8x8x1xi1>, vector<8x8x1xf32>
    %cst_14 = arith.constant dense<0xFF800000> : vector<8x1xf32>
    %19 = vector.multi_reduction <maximumf>, %18, %cst_14 [1] : vector<8x8x1xf32> to vector<8x1xf32>
    %20 = vector.shape_cast %19 : vector<8x1xf32> to vector<8x1x1xf32>
    %21 = vector.broadcast %20 : vector<8x1x1xf32> to vector<8x8x1xf32>
    %22 = arith.subf %18, %21 : vector<8x8x1xf32>
    %23 = math.exp %22 : vector<8x8x1xf32>
    %cst_15 = arith.constant 0.000000e+00 : f32
    %24 = vector.broadcast %cst_15 : f32 to vector<8x8x1xf32>
    %25 = arith.select %16, %23, %24 : vector<8x8x1xi1>, vector<8x8x1xf32>
    %cst_16 = arith.constant dense<0.000000e+00> : vector<8x1xf32>
    %26 = vector.multi_reduction <add>, %25, %cst_16 [1] : vector<8x8x1xf32> to vector<8x1xf32>
    %27 = vector.shape_cast %26 : vector<8x1xf32> to vector<8x1x1xf32>
    %cst_17 = arith.constant 9.99999968E-21 : f32
    %28 = vector.broadcast %cst_17 : f32 to vector<8x1x1xf32>
    %29 = arith.maximumf %27, %28 : vector<8x1x1xf32>
    %30 = tpu.reciprocal %29 {approx = true} : vector<8x1x1xf32> -> vector<8x1x1xf32>
    %31 = vector.broadcast %30 : vector<8x1x1xf32> to vector<8x8x1xf32>
    %32 = arith.mulf %25, %31 : vector<8x8x1xf32>
    %33 = arith.extf %0 : vector<8x8x32xbf16> to vector<8x8x32xf32>
    %34 = vector.broadcast %32 : vector<8x8x1xf32> to vector<8x8x32xf32>
    %35 = arith.mulf %34, %33 : vector<8x8x32xf32>
    %cst_18 = arith.constant dense<0.000000e+00> : vector<8x32xf32>
    %36 = vector.multi_reduction <add>, %35, %cst_18 [1] : vector<8x8x32xf32> to vector<8x32xf32>
    %37 = arith.truncf %36 : vector<8x32xf32> to vector<8x32xbf16>
    %c0_19 = arith.constant 0 : index
    %c0_20 = arith.constant 0 : index
    %38 = vector.load %arg6[%c0_19, %c0_20] : memref<32x128xbf16, #tpu.memory_space<vmem>>, vector<32x128xbf16>
    %cst_21 = arith.constant dense<0.000000e+00> : vector<8x128xf32>
    %39 = tpu.matmul %37, %38, %cst_21 {dimension_numbers = #tpu.dot_dimension_numbers<[1], [0], [0], [1], [0, 0, 1, 1], [], []>} : vector<8x32xbf16>, vector<32x128xbf16>, vector<8x128xf32> -> vector<8x128xf32>
    %c0_22 = arith.constant 0 : index
    %c0_23 = arith.constant 0 : index
    %40 = vector.load %arg7[%c0_22, %c0_23] : memref<1x128xf32, #tpu.memory_space<vmem>>, vector<1x128xf32>
    %41 = vector.broadcast %40 : vector<1x128xf32> to vector<8x128xf32>
    %42 = arith.addf %39, %41 : vector<8x128xf32>
    %cst_24 = arith.constant 0.000000e+00 : f32
    %43 = vector.broadcast %cst_24 : f32 to vector<8x128xf32>
    %44 = arith.maximumf %42, %43 : vector<8x128xf32>
    %45 = arith.truncf %44 : vector<8x128xf32> to vector<8x128xbf16>
    %c0_25 = arith.constant 0 : index
    %c0_26 = arith.constant 0 : index
    %46 = vector.load %arg8[%c0_25, %c0_26] : memref<128x128xbf16, #tpu.memory_space<vmem>>, vector<128x128xbf16>
    %cst_27 = arith.constant dense<0.000000e+00> : vector<8x128xf32>
    %47 = tpu.matmul %45, %46, %cst_27 {dimension_numbers = #tpu.dot_dimension_numbers<[1], [0], [0], [1], [0, 0, 1, 1], [], []>} : vector<8x128xbf16>, vector<128x128xbf16>, vector<8x128xf32> -> vector<8x128xf32>
    %c0_28 = arith.constant 0 : index
    %c0_29 = arith.constant 0 : index
    %48 = vector.load %arg9[%c0_28, %c0_29] : memref<1x128xf32, #tpu.memory_space<vmem>>, vector<1x128xf32>
    %49 = vector.broadcast %48 : vector<1x128xf32> to vector<8x128xf32>
    %50 = arith.addf %47, %49 : vector<8x128xf32>
    %c8_i32 = arith.constant 8 : i32
    %51 = arith.muli %arg0, %c8_i32 : i32
    %52 = tpu.iota {dimensions = array<i32: 0>} : vector<8x1xi32>
    %53 = vector.broadcast %51 : i32 to vector<8x1xi32>
    %54 = arith.addi %53, %52 : vector<8x1xi32>
    %c13_i32 = arith.constant 13 : i32
    %55 = vector.broadcast %c13_i32 : i32 to vector<8x1xi32>
    %56 = arith.cmpi slt, %54, %55 : vector<8x1xi32>
    %cst_30 = arith.constant 0.000000e+00 : f32
    %57 = vector.shape_cast %56 : vector<8x1xi1> to vector<8x1xi1>
    %58 = vector.broadcast %57 : vector<8x1xi1> to vector<8x128xi1>
    %59 = vector.broadcast %cst_30 : f32 to vector<8x128xf32>
    %60 = arith.select %58, %50, %59 : vector<8x128xi1>, vector<8x128xf32>
    %c0_31 = arith.constant 0 : index
    %c0_32 = arith.constant 0 : index
    %61 = vector.load %arg10[%c0_31, %c0_32] : memref<8x128xf32, #tpu.memory_space<vmem>>, vector<8x128xf32>
    tpu.vector_store %arg10[%c0_31, %c0_32], %60 {strides = array<i32>} : memref<8x128xf32, #tpu.memory_space<vmem>>, vector<8x128xf32>,
    return
  }
  func.func @transform_0(%arg0: i32) -> (i32, i32, i32) {
    %c0_i32 = arith.constant 0 : i32
    %c0_i32_0 = arith.constant 0 : i32
    %c0_i32_1 = arith.constant 0 : i32
    return %arg0, %c0_i32, %c0_i32_0 : i32, i32, i32
  }
  func.func @transform_1(%arg0: i32) -> (i32, i32, i32) {
    %c0_i32 = arith.constant 0 : i32
    %c0_i32_0 = arith.constant 0 : i32
    %c0_i32_1 = arith.constant 0 : i32
    return %arg0, %c0_i32, %c0_i32_0 : i32, i32, i32
  }
  func.func @transform_2(%arg0: i32) -> (i32, i32) {
    %c0_i32 = arith.constant 0 : i32
    %c0_i32_0 = arith.constant 0 : i32
    %c0_i32_1 = arith.constant 0 : i32
    return %c0_i32, %c0_i32_0 : i32, i32
  }
  func.func @transform_3(%arg0: i32) -> (i32, i32) {
    %c0_i32 = arith.constant 0 : i32
    %c0_i32_0 = arith.constant 0 : i32
    %c0_i32_1 = arith.constant 0 : i32
    return %c0_i32, %c0_i32_0 : i32, i32
  }
  func.func @transform_4(%arg0: i32) -> (i32, i32) {
    %c0_i32 = arith.constant 0 : i32
    %c0_i32_0 = arith.constant 0 : i32
    %c0_i32_1 = arith.constant 0 : i32
    return %c0_i32, %c0_i32_0 : i32, i32
  }
  func.func @transform_5(%arg0: i32) -> (i32, i32) {
    %c0_i32 = arith.constant 0 : i32
    %c0_i32_0 = arith.constant 0 : i32
    %c0_i32_1 = arith.constant 0 : i32
    return %c0_i32, %c0_i32_0 : i32, i32
  }
  func.func @transform_6(%arg0: i32) -> (i32, i32) {
    %c0_i32 = arith.constant 0 : i32
    %c0_i32_0 = arith.constant 0 : i32
    %c0_i32_1 = arith.constant 0 : i32
    return %c0_i32, %c0_i32_0 : i32, i32
  }
  func.func @transform_7(%arg0: i32) -> (i32, i32) {
    %c0_i32 = arith.constant 0 : i32
    %c0_i32_0 = arith.constant 0 : i32
    %c0_i32_1 = arith.constant 0 : i32
    return %c0_i32, %c0_i32_0 : i32, i32
  }
  func.func @transform_8(%arg0: i32) -> (i32, i32) {
    %c0_i32 = arith.constant 0 : i32
    %c0_i32_0 = arith.constant 0 : i32
    %c0_i32_1 = arith.constant 0 : i32
    return %c0_i32, %c0_i32_0 : i32, i32
  }
  func.func @transform_9(%arg0: i32) -> (i32, i32) {
    %c0_i32 = arith.constant 0 : i32
    %c0_i32_0 = arith.constant 0 : i32
    return %arg0, %c0_i32 : i32, i32
  }
}

module attributes {stable_mosaic.version = 11 : i64} {
  func.func @kernel(%arg0: i32, %arg1: memref<8x8x32xbf16, #tpu.memory_space<vmem>>, %arg2: memref<8x8x1xf32, #tpu.memory_space<vmem>>, %arg3: memref<32x128xbf16, #tpu.memory_space<vmem>>, %arg4: memref<1x128xf32, #tpu.memory_space<vmem>>, %arg5: memref<1x128xf32, #tpu.memory_space<vmem>>, %arg6: memref<32x128xbf16, #tpu.memory_space<vmem>>, %arg7: memref<1x128xf32, #tpu.memory_space<vmem>>, %arg8: memref<128x128xbf16, #tpu.memory_space<vmem>>, %arg9: memref<1x128xf32, #tpu.memory_space<vmem>>, %arg10: memref<8x128xf32, #tpu.memory_space<vmem>>) attributes {dimension_semantics = [#tpu.dimension_semantics<parallel>], iteration_bounds = array<i64: 2>, scalar_prefetch = 0 : i64, scratch_operands = 0 : i64, tpu.core_type = #tpu.core_type<tc>, window_params = [{transform_indices = @transform_0, window_bounds = array<i64: 8, 8, 32>}, {transform_indices = @transform_1, window_bounds = array<i64: 8, 8, 1>}, {pipeline_mode = #tpu.pipeline_mode<synchronous>, transform_indices = @transform_2, window_bounds = array<i64: 32, 128>}, {pipeline_mode = #tpu.pipeline_mode<synchronous>, transform_indices = @transform_3, window_bounds = array<i64: 1, 128>}, {pipeline_mode = #tpu.pipeline_mode<synchronous>, transform_indices = @transform_4, window_bounds = array<i64: 1, 128>}, {pipeline_mode = #tpu.pipeline_mode<synchronous>, transform_indices = @transform_5, window_bounds = array<i64: 32, 128>}, {pipeline_mode = #tpu.pipeline_mode<synchronous>, transform_indices = @transform_6, window_bounds = array<i64: 1, 128>}, {pipeline_mode = #tpu.pipeline_mode<synchronous>, transform_indices = @transform_7, window_bounds = array<i64: 128, 128>}, {pipeline_mode = #tpu.pipeline_mode<synchronous>, transform_indices = @transform_8, window_bounds = array<i64: 1, 128>}, {transform_indices = @transform_9, window_bounds = array<i64: 8, 128>}]} {
    %c0 = arith.constant 0 : index
    %c0_0 = arith.constant 0 : index
    %c0_1 = arith.constant 0 : index
    %0 = vector.load %arg1[%c0, %c0_0, %c0_1] : memref<8x8x32xbf16, #tpu.memory_space<vmem>>, vector<8x8x32xbf16>
    %c0_2 = arith.constant 0 : index
    %c0_3 = arith.constant 0 : index
    %c0_4 = arith.constant 0 : index
    %1 = vector.load %arg2[%c0_2, %c0_3, %c0_4] : memref<8x8x1xf32, #tpu.memory_space<vmem>>, vector<8x8x1xf32>
    %2 = vector.shape_cast %0 : vector<8x8x32xbf16> to vector<64x32xbf16>
    %c0_5 = arith.constant 0 : index
    %c0_6 = arith.constant 0 : index
    %3 = vector.load %arg3[%c0_5, %c0_6] : memref<32x128xbf16, #tpu.memory_space<vmem>>, vector<32x128xbf16>
    %cst = arith.constant dense<0.000000e+00> : vector<64x128xf32>
    %4 = tpu.matmul %2, %3, %cst {dimension_numbers = #tpu.dot_dimension_numbers<[1], [0], [0], [1], [0, 0, 1, 1], [], []>} : vector<64x32xbf16>, vector<32x128xbf16>, vector<64x128xf32> -> vector<64x128xf32>
    %c0_7 = arith.constant 0 : index
    %c0_8 = arith.constant 0 : index
    %5 = vector.load %arg4[%c0_7, %c0_8] : memref<1x128xf32, #tpu.memory_space<vmem>>, vector<1x128xf32>
    %6 = vector.broadcast %5 : vector<1x128xf32> to vector<64x128xf32>
    %7 = arith.addf %4, %6 : vector<64x128xf32>
    %8 = math.tanh %7 : vector<64x128xf32>
    %c0_9 = arith.constant 0 : index
    %c0_10 = arith.constant 0 : index
    %9 = vector.load %arg5[%c0_9, %c0_10] : memref<1x128xf32, #tpu.memory_space<vmem>>, vector<1x128xf32>
    %10 = vector.broadcast %9 : vector<1x128xf32> to vector<64x128xf32>
    %11 = arith.mulf %8, %10 : vector<64x128xf32>
    %cst_11 = arith.constant dense<0.000000e+00> : vector<64xf32>
    %12 = vector.multi_reduction <add>, %11, %cst_11 [1] : vector<64x128xf32> to vector<64xf32>
    %13 = vector.shape_cast %12 : vector<64xf32> to vector<64x1xf32>
    %14 = vector.shape_cast %13 : vector<64x1xf32> to vector<8x8x1xf32>
    %cst_12 = arith.constant 0.000000e+00 : f32
    %15 = vector.broadcast %cst_12 : f32 to vector<8x8x1xf32>
    %16 = arith.cmpf ogt, %1, %15 : vector<8x8x1xf32>
    %cst_13 = arith.constant -1.000000e+09 : f32
    %17 = vector.broadcast %cst_13 : f32 to vector<8x8x1xf32>
    %18 = arith.select %16, %14, %17 : vector<8x8x1xi1>, vector<8x8x1xf32>
    %cst_14 = arith.constant dense<0xFF800000> : vector<8x1xf32>
    %19 = vector.multi_reduction <maximumf>, %18, %cst_14 [1] : vector<8x8x1xf32> to vector<8x1xf32>
    %20 = vector.shape_cast %19 : vector<8x1xf32> to vector<8x1x1xf32>
    %21 = vector.broadcast %20 : vector<8x1x1xf32> to vector<8x8x1xf32>
    %22 = arith.subf %18, %21 : vector<8x8x1xf32>
    %23 = math.exp %22 : vector<8x8x1xf32>
    %cst_15 = arith.constant 0.000000e+00 : f32
    %24 = vector.broadcast %cst_15 : f32 to vector<8x8x1xf32>
    %25 = arith.select %16, %23, %24 : vector<8x8x1xi1>, vector<8x8x1xf32>
    %cst_16 = arith.constant dense<0.000000e+00> : vector<8x1xf32>
    %26 = vector.multi_reduction <add>, %25, %cst_16 [1] : vector<8x8x1xf32> to vector<8x1xf32>
    %27 = vector.shape_cast %26 : vector<8x1xf32> to vector<8x1x1xf32>
    %cst_17 = arith.constant 9.99999968E-21 : f32
    %28 = vector.broadcast %cst_17 : f32 to vector<8x1x1xf32>
    %29 = arith.maximumf %27, %28 : vector<8x1x1xf32>
    %30 = tpu.reciprocal %29 {approx = true} : vector<8x1x1xf32> -> vector<8x1x1xf32>
    %31 = vector.broadcast %30 : vector<8x1x1xf32> to vector<8x8x1xf32>
    %32 = arith.mulf %25, %31 : vector<8x8x1xf32>
    %33 = arith.extf %0 : vector<8x8x32xbf16> to vector<8x8x32xf32>
    %34 = vector.broadcast %32 : vector<8x8x1xf32> to vector<8x8x32xf32>
    %35 = arith.mulf %34, %33 : vector<8x8x32xf32>
    %cst_18 = arith.constant dense<0.000000e+00> : vector<8x32xf32>
    %36 = vector.multi_reduction <add>, %35, %cst_18 [1] : vector<8x8x32xf32> to vector<8x32xf32>
    %37 = arith.truncf %36 : vector<8x32xf32> to vector<8x32xbf16>
    %c0_19 = arith.constant 0 : index
    %c0_20 = arith.constant 0 : index
    %38 = vector.load %arg6[%c0_19, %c0_20] : memref<32x128xbf16, #tpu.memory_space<vmem>>, vector<32x128xbf16>
    %cst_21 = arith.constant dense<0.000000e+00> : vector<8x128xf32>
    %39 = tpu.matmul %37, %38, %cst_21 {dimension_numbers = #tpu.dot_dimension_numbers<[1], [0], [0], [1], [0, 0, 1, 1], [], []>} : vector<8x32xbf16>, vector<32x128xbf16>, vector<8x128xf32> -> vector<8x128xf32>
    %c0_22 = arith.constant 0 : index
    %c0_23 = arith.constant 0 : index
    %40 = vector.load %arg7[%c0_22, %c0_23] : memref<1x128xf32, #tpu.memory_space<vmem>>, vector<1x128xf32>
    %41 = vector.broadcast %40 : vector<1x128xf32> to vector<8x128xf32>
    %42 = arith.addf %39, %41 : vector<8x128xf32>
    %cst_24 = arith.constant 0.000000e+00 : f32
    %43 = vector.broadcast %cst_24 : f32 to vector<8x128xf32>
    %44 = arith.maximumf %42, %43 : vector<8x128xf32>
    %45 = arith.truncf %44 : vector<8x128xf32> to vector<8x128xbf16>
    %c0_25 = arith.constant 0 : index
    %c0_26 = arith.constant 0 : index
    %46 = vector.load %arg8[%c0_25, %c0_26] : memref<128x128xbf16, #tpu.memory_space<vmem>>, vector<128x128xbf16>
    %cst_27 = arith.constant dense<0.000000e+00> : vector<8x128xf32>
    %47 = tpu.matmul %45, %46, %cst_27 {dimension_numbers = #tpu.dot_dimension_numbers<[1], [0], [0], [1], [0, 0, 1, 1], [], []>} : vector<8x128xbf16>, vector<128x128xbf16>, vector<8x128xf32> -> vector<8x128xf32>
    %c0_28 = arith.constant 0 : index
    %c0_29 = arith.constant 0 : index
    %48 = vector.load %arg9[%c0_28, %c0_29] : memref<1x128xf32, #tpu.memory_space<vmem>>, vector<1x128xf32>
    %49 = vector.broadcast %48 : vector<1x128xf32> to vector<8x128xf32>
    %50 = arith.addf %47, %49 : vector<8x128xf32>
    %c8_i32 = arith.constant 8 : i32
    %51 = arith.muli %arg0, %c8_i32 : i32
    %52 = tpu.iota {dimensions = array<i32: 0>} : vector<8x1xi32>
    %53 = vector.broadcast %51 : i32 to vector<8x1xi32>
    %54 = arith.addi %53, %52 : vector<8x1xi32>
    %c13_i32 = arith.constant 13 : i32
    %55 = vector.broadcast %c13_i32 : i32 to vector<8x1xi32>
    %56 = arith.cmpi slt, %54, %55 : vector<8x1xi32>
    %cst_30 = arith.constant 0.000000e+00 : f32
    %57 = vector.shape_cast %56 : vector<8x1xi1> to vector<8x1xi1>
    %58 = vector.broadcast %57 : vector<8x1xi1> to vector<8x128xi1>
    %59 = vector.broadcast %cst_30 : f32 to vector<8x128xf32>
    %60 = arith.select %58, %50, %59 : vector<8x128xi1>, vector<8x128xf32>
    %c0_31 = arith.constant 0 : index
    %c0_32 = arith.constant 0 : index
    %61 = vector.load %arg10[%c0_31, %c0_32] : memref<8x128xf32, #tpu.memory_space<vmem>>, vector<8x128xf32>
    tpu.vector_store %arg10[%c0_31, %c0_32], %60 {strides = array<i32>} : memref<8x128xf32, #tpu.memory_space<vmem>>, vector<8x128xf32>,
    return
  }
  func.func @transform_0(%arg0: i32) -> (i32, i32, i32) {
    %c0_i32 = arith.constant 0 : i32
    %c0_i32_0 = arith.constant 0 : i32
    %c0_i32_1 = arith.constant 0 : i32
    return %arg0, %c0_i32, %c0_i32_0 : i32, i32, i32
  }
  func.func @transform_1(%arg0: i32) -> (i32, i32, i32) {
    %c0_i32 = arith.constant 0 : i32
    %c0_i32_0 = arith.constant 0 : i32
    %c0_i32_1 = arith.constant 0 : i32
    return %arg0, %c0_i32, %c0_i32_0 : i32, i32, i32
  }
  func.func @transform_2(%arg0: i32) -> (i32, i32) {
    %c0_i32 = arith.constant 0 : i32
    %c0_i32_0 = arith.constant 0 : i32
    %c0_i32_1 = arith.constant 0 : i32
    return %c0_i32, %c0_i32_0 : i32, i32
  }
  func.func @transform_3(%arg0: i32) -> (i32, i32) {
    %c0_i32 = arith.constant 0 : i32
    %c0_i32_0 = arith.constant 0 : i32
    %c0_i32_1 = arith.constant 0 : i32
    return %c0_i32, %c0_i32_0 : i32, i32
  }
  func.func @transform_4(%arg0: i32) -> (i32, i32) {
    %c0_i32 = arith.constant 0 : i32
    %c0_i32_0 = arith.constant 0 : i32
    %c0_i32_1 = arith.constant 0 : i32
    return %c0_i32, %c0_i32_0 : i32, i32
  }
  func.func @transform_5(%arg0: i32) -> (i32, i32) {
    %c0_i32 = arith.constant 0 : i32
    %c0_i32_0 = arith.constant 0 : i32
    %c0_i32_1 = arith.constant 0 : i32
    return %c0_i32, %c0_i32_0 : i32, i32
  }
  func.func @transform_6(%arg0: i32) -> (i32, i32) {
    %c0_i32 = arith.constant 0 : i32
    %c0_i32_0 = arith.constant 0 : i32
    %c0_i32_1 = arith.constant 0 : i32
    return %c0_i32, %c0_i32_0 : i32, i32
  }
  func.func @transform_7(%arg0: i32) -> (i32, i32) {
    %c0_i32 = arith.constant 0 : i32
    %c0_i32_0 = arith.constant 0 : i32
    %c0_i32_1 = arith.constant 0 : i32
    return %c0_i32, %c0_i32_0 : i32, i32
  }
  func.func @transform_8(%arg0: i32) -> (i32, i32) {
    %c0_i32 = arith.constant 0 : i32
    %c0_i32_0 = arith.constant 0 : i32
    %c0_i32_1 = arith.constant 0 : i32
    return %c0_i32, %c0_i32_0 : i32, i32
  }
  func.func @transform_9(%arg0: i32) -> (i32, i32) {
    %c0_i32 = arith.constant 0 : i32
    %c0_i32_0 = arith.constant 0 : i32
    return %arg0, %c0_i32 : i32, i32
  }
}

</mosaic_0001>

<bundles_post_ra>
// kernel: tpu_custom_call.1
= control target key start
LH: loop header
LB: loop body
LE: loop exit
PB: predicated region body
PF: predicated region fallthrough
CT: control target
= control target key end

     0   :  { %14 = vsyncpa [#allocation3], 0  ;;  %s2030_s0 = inlined_call_operand.vmem [shape: bf16[13,8,32], index: 0, kind: input, shape index: {}]   ;;  %s2031_s1 = inlined_call_operand.vmem [shape: f32[13,8,1], index: 1, kind: input, shape index: {}]   ;;  %s2032_s2 = inlined_call_operand.hbm [shape: bf16[32,128], index: 2, kind: input, shape index: {}]   ;;  %s2033_s3 = inlined_call_operand.vmem [shape: f32[1,128], index: 3, kind: input, shape index: {}]   ;;  %s2034_s4 = inlined_call_operand.vmem [shape: f32[1,128], index: 4, kind: input, shape index: {}]   ;;  %s2035_s5 = inlined_call_operand.hbm [shape: bf16[32,128], index: 5, kind: input, shape index: {}]   ;;  %s2036_s6 = inlined_call_operand.vmem [shape: f32[1,128], index: 6, kind: input, shape index: {}]   ;;  %s2037_s7 = inlined_call_operand.vmem [shape: bf16[128,128], index: 7, kind: input, shape index: {}]   ;;  %s2038_s8 = inlined_call_operand.vmem [shape: f32[1,128], index: 8, kind: input, shape index: {}]   ;;  %s2039_s9 = inlined_call_operand.hbm [shape: f32[16,128], index: 9, kind: output, shape index: {}]  }
   0x1   :  { %15 = vsyncpa [#allocation6], 0 }
   0x2   :  { %16 = vsyncpa [#allocation4], 0 }
   0x3   :  { %18 = vsyncpa [#allocation4 + $0x1], 0  ;;  %s1656_s30 = smov 0   ;;  %s1658_s10 = smov 0  }
   0x4   :  { %s1660_s11 = smov 0   ;;  %s1662_s12 = smov 0  }
   0x5 LB: > { %2046 = sst [smem:[#allocation11_spill]] %s1592_s11  ;;  %s1677_s13 = sadd.s32 4294967295, %s1596_s12   ;;  %s1596_s12 = sphi %s1662_s12, %s2060_s12   ;;  %s1592_s11 = sphi %s1660_s11, %s2062_s11   ;;  %s1588_s10 = sphi %s1658_s10, %s2064_s10   ;;  %s1584_s30 = sphi %s1656_s30, %s2063_s30  }
   0x6   : > { %s1234_s14 = sadd.s32 4294967294, %s1596_s12   ;;  %s1681_s15 = sadd.s32 1, %s1596_s12  }
   0x7   : > { %2047 = sst [smem:[#allocation12_spill]] %s1681_s15  ;;  %s230_s16 = sadd.s32 1, %s1592_s11 }
   0x8   : > { %s227_s17 = ssub.s32 %s1596_s12, %s1681_s15  ;;  %p240_p0 = scmp.ne.s32.totalorder %s1592_s11, %s1588_s10 }
   0x9   : > { %p228_p1 = scmp.eq.s32.totalorder %s227_s17, 0  ;;  %p241_p2 = scmp.eq.s32.totalorder %s1677_s13, 1 }
   0xa   : > { %p246_p3 = scmp.ne.s32.totalorder %s1588_s10, %s1584_s30  ;;  %p247_p4 = scmp.eq.s32.totalorder %s1234_s14, 1 }
   0xb   : > { %s1692_s18 = scalar_select %p228_p1, %s1592_s11, %s230_s16  }
   0xc   : > { %p1694_p5 = por %p241_p2, %p240_p0  ;;  %p1698_p6 = por %p247_p4, %p246_p3 }
   0xd   : > { %2048 = sst [smem:[#allocation13_spill]] %s1692_s18  ;;  %p1235_p7 = scmp.ge.s32.totalorder %s1596_s12, 1 }
   0xe   : > { %s2049_s19 = scalar_select %p1694_p5, 1, 0 }
   0xf   : > { %s2050_s20 = scalar_select %p1698_p6, 1, 0 }
  0x10   : > { %p254_p8 = scmp.lt.s32.totalorder %s1596_s12, 3  ;;  %p2040_p9 = scmp.eq.s32.totalorder %s1677_s13, 0 }
  0x11   : > { %s1598_s22 = smov [#allocation2]   ;;  %s1599_s25 = smov [#allocation5]  }
  0x12   : > { %p1705_p10 = pnand %p1235_p7, %p254_p8  ;;  %s266_s23 = sshll.u32 %s1598_s22, 4  ;;  %s267_s23 = int_to_ptr.vmem [resolvable:$true] %s266_s23 }
  0x13   : > { %s285_s26 = sshll.u32 %s1599_s25, 4  ;;  %s1470_s29 = scalar_lea.hbm %s2032_s2, 256  ;;  %s1717_s26 = int_to_ptr.vmem [resolvable:$true] %s285_s26 }
  0x14   : > { %s2051_s21 = scalar_select %p1705_p10, 1, 0 }
  0x15   : > { %p1345_p11 = pneg %p1705_p10  ;;  %p1471_p13 = scmp.ne.s32.totalorder %s2032_s2, %s1470_s29 }
  0x16   : > { %p1477_p3 = scmp.lt.u32.totalorder %s1470_s29, %s2032_s2 }
  0x17   : > { %p1713_p12 = pnand %p2040_p9, %p1345_p11 }
  0x19   : > { %p1472_p0 = pneg %p1713_p12 }
  0x1b   : > { %p1473_p1 = pnand %p1472_p0, %p1471_p13 }
  0x1d   : > { %p1474_p2 = pneg %p1473_p1 }
  0x1f   : > { %p1479_p4 = pnand %p1477_p3, %p1474_p2 }
  0x21   : > { %1482 = shalt.err (!%p1479_p4)
}
  0x22   : > { %s1483_s25 = scalar_lea.vmem %s267_s23, 256  ;;  %p1491_p9 = scmp.lt.s32.totalorder %s267_s23, %s267_s23 }
  0x23   : > { %p1484_p7 = scmp.ne.s32.totalorder %s267_s23, %s1483_s25  ;;  %p1492_p6 = scmp.lt.s32.totalorder %s1483_s25, %s1483_s25 }
  0x25   : > { %p1486_p8 = pnand %p1484_p7, %p1472_p0  ;;  %p1493_p5 = por %p1492_p6, %p1491_p9 }
  0x27   : > { %p1487_p11 = pneg %p1486_p8 }
  0x29   : > { %p1494_p10 = pnand %p1493_p5, %p1487_p11 }
  0x2b   : > { %1497 = shalt.err (!%p1494_p10)
}
  0x2c   : > { %s1600_s27 = smov 64   ;;  %s1601_s28 = smov 4  }
  0x2d   : > { %1348 = dma.hbm_to_vmem [thread:$0]  (!%p1713_p12), %s2032_s2, 256, %s267_s23, [#allocation3], %s1600_s27, %s1600_s27, %s1601_s28  }
  0x2e   : > { %s1498_s22 = scalar_lea.hbm %s2035_s5, 256 }
  0x2f   : > { %p1499_p13 = scmp.ne.s32.totalorder %s2035_s5, %s1498_s22  ;;  %p1505_p9 = scmp.lt.u32.totalorder %s1498_s22, %s2035_s5 }
  0x31   : > { %p1501_p5 = pnand %p1499_p13, %p1472_p0 }
  0x33   : > { %p1502_p6 = pneg %p1501_p5 }
  0x35   : > { %p1507_p10 = pnand %p1505_p9, %p1502_p6 }
  0x37   : > { %1510 = shalt.err (!%p1507_p10)
}
  0x38   : > { %s1511_s23 = scalar_lea.vmem %s1717_s26, 256  ;;  %p1519_p4 = scmp.lt.s32.totalorder %s1717_s26, %s1717_s26 }
  0x39   : > { %p1512_p1 = scmp.ne.s32.totalorder %s1717_s26, %s1511_s23  ;;  %p1520_p7 = scmp.lt.s32.totalorder %s1511_s23, %s1511_s23 }
  0x3b   : > { %p1514_p2 = pnand %p1512_p1, %p1472_p0  ;;  %p1521_p8 = por %p1520_p7, %p1519_p4 }
  0x3d   : > { %p1515_p3 = pneg %p1514_p2 }
  0x3f   : > { %p1522_p11 = pnand %p1521_p8, %p1515_p3 }
  0x41   : > { %1525 = shalt.err (!%p1522_p11)
}
  0x42   : > { %1351 = dma.hbm_to_vmem [thread:$0]  (!%p1713_p12), %s2035_s5, 256, %s1717_s26, [#allocation6], %s1600_s27, %s1600_s27, %s1601_s28  }
  0x43   : > { %p2053_p13 = scmp.ne.s32.totalorder %s2051_s21, 0 }
  0x44   : > { %p2054_p5 = scmp.eq.s32.totalorder (!%p2053_p13), %s1677_s13, 0 }
  0x45   : > { %344 = sbr.rel (%p2053_p13) target bundleno = 1142 (0x476), region = 56 }
  0x4c   : > { %1571 = dma.done.wait (%p2054_p5), [#allocation3], 256   ;;  %p2055_p0 = pmov %p2054_p5 }
  0x4e   : > { %1573 = vsyncadd (%p2055_p0), [#allocation3], 4294967040  ;;  %p2056_p6 = pmov %p2055_p0 }
  0x4f   : > { %p2057_p9 = pmov %p2055_p0 }
  0x50   : > { %1575 = dma.done.wait (%p2056_p6), [#allocation6], 256  }
  0x51   : > { %1577 = vsyncadd (%p2057_p9), [#allocation6], 4294967040  ;;  %s1777_s18 = sshll.u32 %s1677_s13, 3  ;;  %v1402_v0 = vld [vmem:[#allocation2] sm:$0xff]   ;;  %v1403_v1 = vld [vmem:[#allocation2 + $0x8] sm:$0xff]   ;;  %vm485_vm0 = vcmask 261120  }
  0x52   : > { %p402_p12 = scmp.lt.s32.totalorder %s1777_s18, 12  ;;  %1295 = vmatprep.subr.bf16.mxu1 %v1402_v0  ;;  %v1247_v6 = vld [vmem:[%s2033_s3] ss:$0 sm:$0xff]  ;;  %v1602_v40 = vmov 0   ;;  %vm618_vm2 = vcmask 7168   ;;  %vm1604_vm10 = vmmov 0  }
  0x53   : > { %1296 = vmatpush3.bf16.msra.mxu1 %v1402_v0  ;;  %v1258_v21 = vld [vmem:[%s2034_s4] ss:$0 sm:$0xff]  ;;  %1401 = vset.pattern.permute.xlu1 %v1602_v40  ;;  %vm934_vm11 = vcmask 1041409   ;;  %vm936_vm12 = vcmask 1042434   ;;  %vm938_vm13 = vcmask 1043459   ;;  %vm940_vm14 = vcmask 1044484  }
  0x54   : > { %s1781_s21 = scalar_select %p402_p12, %s1777_s18, 12  ;;  %1297 = vmatprep.subr.bf16.mxu1 %v1403_v1  ;;  %1400 = vset.pattern.permute.xlu0 %v1602_v40  ;;  %vm942_vm15 = vcmask 1045509  }
  0x55   : > { %s394_s27 = sand.u32 1, %s1588_s10   ;;  %s1274_s16 = sshll.u32 %s1677_s13, 7 }
  0x56   : > { %s1244_s24 = sshll.u32 %s1781_s21, 2  ;;  %s1246_s22 = sshll.u32 %s1781_s21, 3 }
  0x57   : > { %s405_s28 = scalar_lea.vmem %s2030_s0, %s1244_s24  ;;  %1298 = vmatpush3.bf16.msra.mxu1 %v1403_v1  ;;  %s1813_s11 = scalar_lea.vmem %s2031_s1, %s1246_s22 }
  0x58   : > { %v1787_v2 = vld [vmem:[%s405_s28] sm:$0xff]   ;;  %v1789_v3 = vld [vmem:[%s405_s28 + $0x8] sm:$0xff]   ;;  %v1791_v4 = vld [vmem:[%s405_s28 + $0x10] sm:$0xff]   ;;  %s1128_s13 = scalar_lea.sflag [#allocation4], %s394_s27  ;;  %p2058_p1 = scmp.ne.s32.totalorder %s2049_s19, 0 }
  0x59   : > { %1299 = vmatprep.mubr.msk.bf16.mxu1 %vm485_vm0, %v1787_v2  ;;  %v1799_v5 = vld [vmem:[%s405_s28 + $0x18] sm:$0xff]   ;;  %v1816_v41 = vld [vmem:[%s1813_s11 + $0x10] sm:$0xff]  ;;  %v1819_v42 = vld [vmem:[%s1813_s11] sm:$0xff]  ;;  %s1242_s28 = sshll.u32 %s394_s27, 3  ;;  %s1605_s15 = smov [#allocation7]  }
  0x5a   : > { %1300 = vmatmul.mubr.msk.bf16.vlgmr.msra.gmra.mrb[0].mxu1 %vm485_vm0, %v1789_v3  ;;  %vm604_vm1 = vcmp.gt.f32.partialorder %v1816_v41, 0.0  ;;  %vm602_vm3 = vcmp.gt.f32.partialorder %v1819_v42, 0.0  ;;  %v1824_v43 = vld [vmem:[%s1813_s11 + $0x18] sm:$0xff]  ;;  %v1827_v45 = vld [vmem:[%s1813_s11 + $0x8] sm:$0xff]  ;;  %v1838_v54 = vld [vmem:[%s1813_s11 + $0x20] sm:$0xff]  ;;  %s396_s17 = scalar_lea.vmem [#allocation7], %s1242_s28 }
  0x5b   : > { %1303 = vmatprep.mubr.msk.bf16.mxu1 %vm485_vm0, %v1791_v4  ;;  %vm605_vm4 = vcmp.gt.f32.partialorder %v1824_v43, 0.0  ;;  %vm603_vm5 = vcmp.gt.f32.partialorder %v1827_v45, 0.0  ;;  %v1849_v61 = vld [vmem:[%s1813_s11 + $0x28] sm:$0xff]  ;;  %vm606_vm6 = vcmp.gt.f32.partialorder %v1838_v54, 0.0  ;;  %s1141_s22 = sshll.u32 %s396_s17, 4  ;;  %s1530_s21 = sshll.u32 %s1605_s15, 4  ;;  %s1990_s22 = int_to_ptr.vmem [resolvable:$true] %s1141_s22  ;;  %s1531_s21 = int_to_ptr.vmem [resolvable:$false] %s1530_s21 }
  0x5c   : > { %vm607_vm7 = vcmp.gt.f32.partialorder %v1849_v61, 0.0  ;;  %s1532_s24 = scalar_lea.vmem %s1531_s21, 256  ;;  %p1533_p4 = scmp.lt.s32.totalorder %s1990_s22, %s1531_s21 }
  0x62   : > { %1304 = vmatmul.mubr.msk.bf16.gmra.mrb[4].mxu1 %vm485_vm0, %v1799_v5 }
 0x12d   : > { %v1301_v7 = vpop.f32.mrb[0].mxu1 }
 0x12e   : > { %v541_v8 = vadd.f32 %v1301_v7, %v1247_v6  ;;  %v532_v9 = vpop.f32.mrb[1].mxu1  ;;  %v1854_v7 = vld [vmem:[%s1813_s11 + $0x30] sm:$0xff] }
 0x12f   : > { %v533_v10 = vadd.f32 %v1247_v6, %v532_v9  ;;  %v1302_v11 = vpop.f32.mrb[2].mxu1  ;;  %vm608_vm8 = vcmp.gt.f32.partialorder %v1854_v7, 0.0 }
 0x130   : > { %1422 = vtanh.f32 %v541_v8  ;;  %v544_v12 = vadd.f32 %v1302_v11, %v1247_v6  ;;  %v535_v13 = vpop.f32.mrb[3].mxu1 }
 0x131   : > { %1424 = vtanh.f32 %v533_v10  ;;  %v536_v14 = vadd.f32 %v1247_v6, %v535_v13 }
 0x132   : > { %1426 = vtanh.f32 %v544_v12 }
 0x133   : > { %1428 = vtanh.f32 %v536_v14  ;;  %v1860_v14 = vld [vmem:[%s1813_s11 + $0x38] sm:$0xff]  ;;  %s1988_s11 = scalar_lea.hbm %s2039_s9, %s1274_s16 }
 0x134   : > { %vm609_vm9 = vcmp.gt.f32.partialorder %v1860_v14, 0.0 }
 0x135   : > { %v1305_v15 = vpop.f32.mrb[4].mxu1 }
 0x136   : > { %v557_v16 = vadd.f32 %v1305_v15, %v1247_v6  ;;  %v548_v17 = vpop.f32.mrb[5].mxu1 }
 0x137   : > { %v549_v18 = vadd.f32 %v1247_v6, %v548_v17  ;;  %v1306_v19 = vpop.f32.mrb[6].mxu1 }
 0x138   : > { %v551_v20 = vpop.f32.mrb[7].mxu1  ;;  %v560_v22 = vadd.f32 %v1306_v19, %v1247_v6 }
 0x139   : > { %1430 = vtanh.f32 %v549_v18  ;;  %v552_v23 = vadd.f32 %v1247_v6, %v551_v20 }
 0x13a   : > { %v1423_v24 = vpop.eup %1422  ;;  %1432 = vtanh.f32 %v557_v16 }
 0x13b   : > { %v1425_v25 = vpop.eup %1424  ;;  %1434 = vtanh.f32 %v552_v23  ;;  %v580_v26 = vmul.f32 %v1423_v24, %v1258_v21 }
 0x13c   : > { %v1427_v27 = vpop.eup %1426  ;;  %v578_v28 = vmul.f32 %v1425_v25, %v1258_v21  ;;  %1436 = vtanh.f32 %v560_v22 }
 0x13d   : > { %v1429_v29 = vpop.eup %1428  ;;  %590 = vadd.xlane.f32.xlu1 %v580_v26  ;;  %v581_v30 = vmul.f32 %v1427_v27, %v1258_v21 }
 0x13e   : > { %586 = vadd.xlane.f32.xlu0 %v578_v28  ;;  %v579_v31 = vmul.f32 %v1429_v29, %v1258_v21 }
 0x141   : > { %592 = vadd.xlane.f32.xlu1 %v581_v30 }
 0x142   : > { %588 = vadd.xlane.f32.xlu0 %v579_v31 }
 0x143   : > { %v1431_v32 = vpop.eup %1430 }
 0x144   : > { %v1433_v33 = vpop.eup %1432  ;;  %v582_v34 = vmul.f32 %v1431_v32, %v1258_v21 }
 0x145   : > { %v1435_v35 = vpop.eup %1434  ;;  %v584_v38 = vmul.f32 %v1433_v33, %v1258_v21 }
 0x146   : > { %594 = vadd.xlane.f32.xlu0 %v582_v34  ;;  %v583_v36 = vmul.f32 %v1435_v35, %v1258_v21  ;;  %v1437_v37 = vpop.eup %1436 }
 0x147   : > { %v585_v39 = vmul.f32 %v1437_v37, %v1258_v21 }
 0x148   : > { %596 = vadd.xlane.f32.xlu1 %v583_v36 }
 0x14a   : > { %598 = vadd.xlane.f32.xlu0 %v584_v38 }
 0x14c   : > { %600 = vadd.xlane.f32.xlu1 %v585_v39 }
 0x1ca   : > { %v591_v44 = vpop.xlane.xlu1 %590 }
 0x1cb   : > { %v612_v46 = vsel %vm604_vm1, %v591_v44, -1e+09  ;;  %v587_v47 = vpop.xlane.xlu0 %586 }
 0x1cc   : > { %v633_v48 = vsel %vm618_vm2, %v612_v46, -inf  ;;  %v610_v49 = vsel %vm602_vm3, %v587_v47, -1e+09 }
 0x1cd   : > { %v634_v50 = vrot.slane %v633_v48, 4  ;;  %v619_v51 = vsel %vm618_vm2, %v610_v49, -inf }
 0x1ce   : > { %v620_v52 = vrot.slane %v619_v51, 4  ;;  %v593_v53 = vpop.xlane.xlu1 %592 }
 0x1cf   : > { %v635_v55 = vmax.f32 %v633_v48, %v634_v50  ;;  %v1842_v56 = vsel %vm605_vm4, %v593_v53, -1e+09  ;;  %v589_v57 = vpop.xlane.xlu0 %588 }
 0x1d0   : > { %v621_v58 = vmax.f32 %v619_v51, %v620_v52  ;;  %v640_v59 = vsel %vm618_vm2, %v1842_v56, -inf  ;;  %v611_v60 = vsel %vm603_vm5, %v589_v57, -1e+09 }
 0x1d1   : > { %v636_v62 = vrot.slane %v635_v55, 2  ;;  %v641_v63 = vrot.slane %v640_v59, 4  ;;  %v626_v0 = vsel %vm618_vm2, %v611_v60, -inf }
 0x1d2   : > { %v622_v1 = vrot.slane %v621_v58, 2  ;;  %v627_v6 = vrot.slane %v626_v0, 4 }
 0x1d3   : > { %v637_v8 = vmax.f32 %v635_v55, %v636_v62  ;;  %v642_v9 = vmax.f32 %v640_v59, %v641_v63  ;;  %v595_v10 = vpop.xlane.xlu0 %594 }
 0x1d4   : > { %v623_v11 = vmax.f32 %v621_v58, %v622_v1  ;;  %v628_v12 = vmax.f32 %v626_v0, %v627_v6  ;;  %v614_v13 = vsel %vm606_vm6, %v595_v10, -1e+09 }
 0x1d5   : > { %v638_v15 = vrot.slane %v637_v8, 1  ;;  %v643_v16 = vrot.slane %v642_v9, 2  ;;  %v647_v17 = vsel %vm618_vm2, %v614_v13, -inf  ;;  %v597_v18 = vpop.xlane.xlu1 %596 }
 0x1d6   : > { %v624_v19 = vrot.slane %v623_v11, 1  ;;  %v629_v20 = vrot.slane %v628_v12, 2  ;;  %v648_v21 = vrot.slane %v647_v17, 4  ;;  %v615_v22 = vsel %vm607_vm7, %v597_v18, -1e+09 }
 0x1d7   : > { %v639_v23 = vmax.f32 %v637_v8, %v638_v15  ;;  %v644_v24 = vmax.f32 %v642_v9, %v643_v16  ;;  %v654_v25 = vsel %vm618_vm2, %v615_v22, -inf  ;;  %v599_v26 = vpop.xlane.xlu0 %598 }
 0x1d8   : > { %v625_v27 = vmax.f32 %v623_v11, %v624_v19  ;;  %v630_v28 = vmax.f32 %v628_v12, %v629_v20  ;;  %v649_v29 = vmax.f32 %v647_v17, %v648_v21  ;;  %v655_v30 = vrot.slane %v654_v25, 4 }
 0x1d9   : > { %v677_v31 = vsub.f32 %v612_v46, %v639_v23  ;;  %v645_v32 = vrot.slane %v644_v24, 1  ;;  %v616_v33 = vsel %vm608_vm8, %v599_v26, -1e+09  ;;  %v601_v34 = vpop.xlane.xlu1 %600 }
 0x1da   : > { %v675_v35 = vsub.f32 %v610_v49, %v625_v27  ;;  %v631_v36 = vrot.slane %v630_v28, 1  ;;  %v650_v37 = vrot.slane %v649_v29, 2  ;;  %v656_v38 = vmax.f32 %v654_v25, %v655_v30 }
 0x1db   : > { %v687_v39 = vmul.f32 1.442695, %v677_v31  ;;  %v646_v40 = vmax.f32 %v644_v24, %v645_v32  ;;  %v661_v44 = vsel %vm618_vm2, %v616_v33, -inf  ;;  %v617_v47 = vsel %vm609_vm9, %v601_v34, -1e+09 }
 0x1dc   : > { %v683_v48 = vmul.f32 1.442695, %v675_v35  ;;  %v632_v50 = vmax.f32 %v630_v28, %v631_v36  ;;  %v651_v51 = vmax.f32 %v649_v29, %v650_v37  ;;  %v657_v46 = vrot.slane %v656_v38, 2 }
 0x1dd   : > { %1438 = vpow2.f32 %v687_v39  ;;  %v678_v52 = vsub.f32 %v1842_v56, %v646_v40  ;;  %v662_v53 = vrot.slane %v661_v44, 4  ;;  %v668_v49 = vsel %vm618_vm2, %v617_v47, -inf }
 0x1de   : > { %1440 = vpow2.f32 %v683_v48  ;;  %v676_v55 = vsub.f32 %v611_v60, %v632_v50  ;;  %v652_v57 = vrot.slane %v651_v51, 1  ;;  %v658_v58 = vmax.f32 %v656_v38, %v657_v46 }
 0x1df   : > { %v689_v59 = vmul.f32 1.442695, %v678_v52  ;;  %v663_v62 = vmax.f32 %v661_v44, %v662_v53  ;;  %v669_v63 = vrot.slane %v668_v49, 4 }
 0x1e0   : > { %v685_v0 = vmul.f32 1.442695, %v676_v55  ;;  %v653_v1 = vmax.f32 %v651_v51, %v652_v57  ;;  %v659_v6 = vrot.slane %v658_v58, 1 }
 0x1e1   : > { %1442 = vpow2.f32 %v689_v59  ;;  %v664_v8 = vrot.slane %v663_v62, 2  ;;  %v670_v9 = vmax.f32 %v668_v49, %v669_v63 }
 0x1e2   : > { %1444 = vpow2.f32 %v685_v0  ;;  %v679_v10 = vsub.f32 %v614_v13, %v653_v1  ;;  %v660_v11 = vmax.f32 %v658_v58, %v659_v6 }
 0x1e3   : > { %v665_v56 = vmax.f32 %v663_v62, %v664_v8  ;;  %v671_v12 = vrot.slane %v670_v9, 2 }
 0x1e4   : > { %v691_v15 = vmul.f32 1.442695, %v679_v10  ;;  %v680_v16 = vsub.f32 %v615_v22, %v660_v11 }
 0x1e5   : > { %v666_v17 = vrot.slane %v665_v56, 1  ;;  %v672_v60 = vmax.f32 %v670_v9, %v671_v12 }
 0x1e6   : > { %1446 = vpow2.f32 %v691_v15  ;;  %v693_v18 = vmul.f32 1.442695, %v680_v16 }
 0x1e7   : > { %v1439_v19 = vpop.eup %1438  ;;  %v667_v20 = vmax.f32 %v665_v56, %v666_v17  ;;  %v673_v21 = vrot.slane %v672_v60, 1 }
 0x1e8   : > { %v1441_v23 = vpop.eup %1440  ;;  %v1877_v24 = vsel %vm604_vm1, %v1439_v19, 0.0  ;;  %1448 = vpow2.f32 %v693_v18  ;;  %vm944_vm1 = vcmask 1046534  }
 0x1e9   : > { %v721_v13 = vsel %vm618_vm2, %v1877_v24, 0.0  ;;  %v1883_v25 = vsel %vm602_vm3, %v1441_v23, 0.0  ;;  %v681_v22 = vsub.f32 %v616_v33, %v667_v20  ;;  %v674_v26 = vmax.f32 %v672_v60, %v673_v21 }
 0x1ea   : > { %v722_v27 = vrot.slane %v721_v13, 4  ;;  %v707_v28 = vsel %vm618_vm2, %v1883_v25, 0.0 }
 0x1eb   : > { %v1443_v29 = vpop.eup %1442  ;;  %v708_v30 = vrot.slane %v707_v28, 4  ;;  %v695_v31 = vmul.f32 1.442695, %v681_v22  ;;  %v682_v41 = vsub.f32 %v617_v47, %v674_v26 }
 0x1ec   : > { %v1445_v32 = vpop.eup %1444  ;;  %v723_v34 = vadd.f32 %v722_v27, %v721_v13  ;;  %v1889_v35 = vsel %vm605_vm4, %v1443_v29, 0.0 }
 0x1ed   : > { %v709_v36 = vadd.f32 %v708_v30, %v707_v28  ;;  %v728_v42 = vsel %vm618_vm2, %v1889_v35, 0.0  ;;  %v1895_v33 = vsel %vm603_vm5, %v1445_v32, 0.0  ;;  %1450 = vpow2.f32 %v695_v31 }
 0x1ee   : > { %v724_v37 = vrot.slane %v723_v34, 2  ;;  %v729_v38 = vrot.slane %v728_v42, 4  ;;  %v714_v39 = vsel %vm618_vm2, %v1895_v33, 0.0  ;;  %v697_v40 = vmul.f32 1.442695, %v682_v41 }
 0x1ef   : > { %v710_v44 = vrot.slane %v709_v36, 2  ;;  %v715_v47 = vrot.slane %v714_v39, 4 }
 0x1f0   : > { %v1447_v43 = vpop.eup %1446  ;;  %v725_v48 = vadd.f32 %v724_v37, %v723_v34  ;;  %v730_v50 = vadd.f32 %v729_v38, %v728_v42  ;;  %1452 = vpow2.f32 %v697_v40 }
 0x1f1   : > { %v711_v51 = vadd.f32 %v710_v44, %v709_v36  ;;  %v716_v46 = vadd.f32 %v715_v47, %v714_v39  ;;  %v1901_v45 = vsel %vm606_vm6, %v1447_v43, 0.0 }
 0x1f2   : > { %v1449_v52 = vpop.eup %1448  ;;  %v726_v53 = vrot.slane %v725_v48, 1  ;;  %v731_v49 = vrot.slane %v730_v50, 2  ;;  %v735_v55 = vsel %vm618_vm2, %v1901_v45, 0.0 }
 0x1f3   : > { %v712_v57 = vrot.slane %v711_v51, 1  ;;  %v717_v58 = vrot.slane %v716_v46, 2  ;;  %v736_v59 = vrot.slane %v735_v55, 4  ;;  %v1907_v62 = vsel %vm607_vm7, %v1449_v52, 0.0 }
 0x1f4   : > { %v727_v63 = vadd.f32 %v726_v53, %v725_v48  ;;  %v732_v0 = vadd.f32 %v731_v49, %v730_v50  ;;  %v742_v54 = vsel %vm618_vm2, %v1907_v62, 0.0 }
 0x1f5   : > { %v713_v1 = vadd.f32 %v712_v57, %v711_v51  ;;  %v718_v6 = vadd.f32 %v717_v58, %v716_v46  ;;  %v737_v8 = vadd.f32 %v736_v59, %v735_v55  ;;  %v743_v9 = vrot.slane %v742_v54, 4 }
 0x1f6   : > { %v765_v10 = vmax.f32 %v727_v63, 1e-20  ;;  %v733_v11 = vrot.slane %v732_v0, 1 }
 0x1f7   : > { %v1451_v56 = vpop.eup %1450  ;;  %v763_v12 = vmax.f32 %v713_v1, 1e-20  ;;  %v719_v15 = vrot.slane %v718_v6, 1  ;;  %v738_v16 = vrot.slane %v737_v8, 2  ;;  %v744_v17 = vadd.f32 %v743_v9, %v742_v54  ;;  %v1409_v9 = vld [vmem:[#allocation5 + $0x8] sm:$0xff]  }
 0x1f8   : > { %1454 = vrcp.f32 %v765_v10  ;;  %v734_v61 = vadd.f32 %v733_v11, %v732_v0  ;;  %v705_v60 = vsel %vm608_vm8, %v1451_v56, 0.0  ;;  %v1412_v10 = vld [vmem:[%s2037_s7 + $0x10] sm:$0xff]   ;;  %v1413_v11 = vld [vmem:[%s2037_s7 + $0x18] sm:$0xff]   ;;  %v1414_v56 = vld [vmem:[%s2037_s7 + $0x20] sm:$0xff]  }
 0x1f9   : > { %1456 = vrcp.f32 %v763_v12  ;;  %v720_v18 = vadd.f32 %v719_v15, %v718_v6  ;;  %v739_v21 = vadd.f32 %v738_v16, %v737_v8  ;;  %v749_v23 = vsel %vm618_vm2, %v705_v60, 0.0  ;;  %v1408_v6 = vld [vmem:[#allocation5] sm:$0xff]   ;;  %v1415_v12 = vld [vmem:[%s2037_s7 + $0x28] sm:$0xff]  }
 0x1fa   : > { %v1453_v19 = vpop.eup %1452  ;;  %v766_v20 = vmax.f32 %v734_v61, 1e-20  ;;  %v745_v22 = vrot.slane %v744_v17, 2  ;;  %v750_v26 = vrot.slane %v749_v23, 4  ;;  %v1603_v8 = vmov 0.0  }
 0x1fb   : > { %v764_v13 = vmax.f32 %v720_v18, 1e-20  ;;  %v706_v27 = vsel %vm609_vm9, %v1453_v19, 0.0  ;;  %v740_v29 = vrot.slane %v739_v21, 1  ;;  %1307 = vmatprep.subr.bf16.mxu1 %v1603_v8  ;;  %1315 = vmatprep.subr.bf16.mxu0 %v1603_v8  ;;  %v787_v15 = vunpack.c.l.bf16 %v1787_v2 }
 0x1fc   : > { %1458 = vrcp.f32 %v766_v20  ;;  %v751_v28 = vadd.f32 %v750_v26, %v749_v23  ;;  %v756_v7 = vsel %vm618_vm2, %v706_v27, 0.0  ;;  %v746_v30 = vadd.f32 %v745_v22, %v744_v17  ;;  %1308 = vmatpush3.bf16.msra.mxu1 %v1408_v6  ;;  %1311 = vmatprep.mubr.msk.bf16.mxu1 %vm1604_vm10, %v1603_v8 }
 0x1fd   : > { %1460 = vrcp.f32 %v764_v13  ;;  %v757_v41 = vrot.slane %v756_v7, 4  ;;  %v741_v42 = vadd.f32 %v740_v29, %v739_v21  ;;  %1309 = vmatprep.subr.bf16.mxu1 %v1603_v8  ;;  %1331 = vmatprep.mubr.msk.bf16.mxu0 %vm1604_vm10, %v1603_v8  ;;  %v789_v16 = vunpack.c.l.bf16 %v1789_v3 }
 0x1fe   : > { %v752_v31 = vrot.slane %v751_v28, 2  ;;  %v747_v39 = vrot.slane %v746_v30, 1  ;;  %v788_v13 = vunpack.c.h.bf16 %v1787_v2  ;;  %vm946_vm2 = vcmask 1047559  }
 0x1ff   : > { %v758_v34 = vadd.f32 %v757_v41, %v756_v7  ;;  %v767_v50 = vmax.f32 %v741_v42, 1e-20 }
 0x200   : > { %v753_v32 = vadd.f32 %v752_v31, %v751_v28  ;;  %v748_v46 = vadd.f32 %v747_v39, %v746_v30  ;;  %1310 = vmatpush3.bf16.msra.mxu1 %v1409_v9 }
 0x201   : > { %v759_v44 = vrot.slane %v758_v34, 2 }
 0x202   : > { %v1455_v36 = vpop.eup %1454  ;;  %v754_v40 = vrot.slane %v753_v32, 1  ;;  %v768_v55 = vmax.f32 %v748_v46, 1e-20 }
 0x203   : > { %v1457_v37 = vpop.eup %1456  ;;  %v781_v38 = vmul.f32 %v1455_v36, %v1877_v24  ;;  %v760_v43 = vadd.f32 %v759_v44, %v758_v34  ;;  %v793_v36 = vunpack.c.l.bf16 %v1799_v5 }
 0x204   : > { %v779_v14 = vmul.f32 %v1457_v37, %v1883_v25  ;;  %v755_v47 = vadd.f32 %v754_v40, %v753_v32 }
 0x205   : > { %807 = vperm.xlu1 %1401, %v781_v38   ;;  %v761_v53 = vrot.slane %v760_v43, 1 }
 0x206   : > { %v1459_v48 = vpop.eup %1458  ;;  %797 = vperm.xlu0 %1400, %v779_v14   ;;  %v769_v52 = vmax.f32 %v755_v47, 1e-20  ;;  %v791_v14 = vunpack.c.l.bf16 %v1791_v4 }
 0x207   : > { %v782_v51 = vmul.f32 %v1459_v48, %v1889_v35  ;;  %v1461_v49 = vpop.eup %1460  ;;  %v762_v57 = vadd.f32 %v761_v53, %v760_v43 }
 0x208   : > { %1462 = vrcp.f32 %v769_v52  ;;  %v780_v24 = vmul.f32 %v1461_v49, %v1895_v33  ;;  %v792_v49 = vunpack.c.h.bf16 %v1791_v4 }
 0x209   : > { %812 = vperm.xlu1 %1401, %v782_v51   ;;  %1464 = vrcp.f32 %v767_v50  ;;  %v770_v25 = vmax.f32 %v762_v57, 1e-20 }
 0x20a   : > { %1466 = vrcp.f32 %v768_v55 }
 0x20b   : > { %1468 = vrcp.f32 %v770_v25 }
 0x20d   : > { %802 = vperm.xlu1 %1401, %v780_v24  }
 0x212   : > { %v1463_v58 = vpop.eup %1462 }
 0x213   : > { %v785_v59 = vmul.f32 %v1463_v58, %v705_v60  ;;  %v1465_v63 = vpop.eup %1464  ;;  %v790_v60 = vunpack.c.h.bf16 %v1789_v3 }
 0x214   : > { %v783_v35 = vmul.f32 %v1465_v63, %v1901_v45  ;;  %v1467_v0 = vpop.eup %1466  ;;  %v1410_v45 = vld [vmem:[%s2037_s7] sm:$0xff]  }
 0x215   : > { %827 = vperm.xlu1 %1401, %v785_v59   ;;  %v784_v54 = vmul.f32 %v1467_v0, %v1907_v62  ;;  %v1469_v1 = vpop.eup %1468  ;;  %1316 = vmatpush3.bf16.msra.mxu0 %v1410_v45  ;;  %v1411_v62 = vld [vmem:[%s2037_s7 + $0x8] sm:$0xff]  }
 0x216   : > { %v786_v33 = vmul.f32 %v1469_v1, %v706_v27  ;;  %1317 = vmatprep.subr.bf16.mxu0 %v1603_v8  ;;  %v794_v1 = vunpack.c.h.bf16 %v1799_v5 }
 0x219   : > { %817 = vperm.xlu1 %1401, %v783_v35   ;;  %1318 = vmatpush3.bf16.msra.mxu0 %v1411_v62 }
 0x21a   : > { %1319 = vmatprep.subr.bf16.mxu0 %v1603_v8 }
 0x21d   : > { %822 = vperm.xlu1 %1401, %v784_v54   ;;  %1320 = vmatpush3.bf16.msra.mxu0 %v1412_v10 }
 0x21e   : > { %1321 = vmatprep.subr.bf16.mxu0 %v1603_v8 }
 0x221   : > { %832 = vperm.xlu1 %1401, %v786_v33   ;;  %1322 = vmatpush3.bf16.msra.mxu0 %v1413_v11 }
 0x222   : > { %1323 = vmatprep.subr.bf16.mxu0 %v1603_v8 }
 0x225   : > { %1324 = vmatpush3.bf16.msra.mxu0 %v1414_v56 }
 0x226   : > { %1325 = vmatprep.subr.bf16.mxu0 %v1603_v8 }
 0x229   : > { %1326 = vmatpush3.bf16.msra.mxu0 %v1415_v12 }
 0x22a   : > { %1327 = vmatprep.subr.bf16.mxu0 %v1603_v8 }
 0x284   : > { %v808_v17 = vpop.permute.xlu1 %807 }
 0x285   : > { %v798_v61 = vpop.permute.xlu0 %797  ;;  %v837_v19 = vmul.f32 %v808_v17, %v789_v16 }
 0x286   : > { %v835_v18 = vmul.f32 %v798_v61, %v787_v15 }
 0x287   : > { %v857_v22 = vsel %vm485_vm0, %v837_v19, 0.0 }
 0x288   : > { %v843_v20 = vsel %vm485_vm0, %v835_v18, 0.0  ;;  %v813_v21 = vpop.permute.xlu1 %812  ;;  %v858_v7 = vrot.slane %v857_v22, 4 }
 0x289   : > { %v838_v23 = vmul.f32 %v813_v21, %v790_v60  ;;  %v844_v26 = vrot.slane %v843_v20, 4 }
 0x28a   : > { %v859_v32 = vadd.f32 %v858_v7, %v857_v22 }
 0x28b   : > { %v864_v28 = vsel %vm485_vm0, %v838_v23, 0.0  ;;  %v845_v30 = vadd.f32 %v844_v26, %v843_v20 }
 0x28c   : > { %v803_v27 = vpop.permute.xlu1 %802  ;;  %v865_v3 = vrot.slane %v864_v28, 4  ;;  %v860_v39 = vrot.slane %v859_v32, 2 }
 0x28d   : > { %v836_v29 = vmul.f32 %v803_v27, %v788_v13  ;;  %v846_v42 = vrot.slane %v845_v30, 2 }
 0x28e   : > { %v866_v37 = vadd.f32 %v865_v3, %v864_v28  ;;  %v861_v52 = vadd.f32 %v860_v39, %v859_v32 }
 0x28f   : > { %v850_v31 = vsel %vm485_vm0, %v836_v29, 0.0  ;;  %v847_v47 = vadd.f32 %v846_v42, %v845_v30 }
 0x290   : > { %v851_v41 = vrot.slane %v850_v31, 4  ;;  %v867_v43 = vrot.slane %v866_v37, 2  ;;  %v862_v35 = vrot.slane %v861_v52, 1 }
 0x291   : > { %v848_v24 = vrot.slane %v847_v47, 1 }
 0x292   : > { %v852_v34 = vadd.f32 %v851_v41, %v850_v31  ;;  %v868_v57 = vadd.f32 %v867_v43, %v866_v37  ;;  %v863_v56 = vadd.f32 %v862_v35, %v861_v52 }
 0x293   : > { %v849_v33 = vadd.f32 %v848_v24, %v847_v47  ;;  %v1416_v24 = vld [vmem:[%s2037_s7 + $0x30] sm:$0xff]  }
 0x294   : > { %v853_v2 = vrot.slane %v852_v34, 2  ;;  %v828_v38 = vpop.permute.xlu1 %827  ;;  %v869_v9 = vrot.slane %v868_v57, 1  ;;  %v901_v23 = vpack.c.bf16 %v863_v56, %v863_v56  ;;  %1328 = vmatpush3.bf16.msra.mxu0 %v1416_v24 }
 0x295   : > { %v841_v44 = vmul.f32 %v828_v38, %v793_v36  ;;  %v899_v16 = vpack.c.bf16 %v849_v33, %v849_v33  ;;  %1329 = vmatprep.subr.bf16.mxu0 %v1603_v8  ;;  %v1118_v8 = vlaneseq  ;;  %v1120_v33 = vstv %s1777_s18  ;;  %s1526_s18 = scalar_lea.vmem %s1990_s22, 128 }
 0x296   : > { %v854_v40 = vadd.f32 %v853_v2, %v852_v34  ;;  %v870_v60 = vadd.f32 %v869_v9, %v868_v57  ;;  %v928_v41 = vunpack.c.l.b16 %v901_v23  ;;  %v1259_v57 = vld [vmem:[%s2036_s6] ss:$0 sm:$0xff]  ;;  %p1527_p10 = scmp.ne.s32.totalorder %s1990_s22, %s1526_s18  ;;  %p1534_p7 = scmp.lt.s32.totalorder %s1532_s24, %s1526_s18 }
 0x297   : > { %v885_v48 = vsel %vm485_vm0, %v841_v44, 0.0  ;;  %v926_v22 = vunpack.c.l.b16 %v899_v16  ;;  %v1263_v9 = vld [vmem:[%s2038_s8] ss:$0 sm:$0xff] }
 0x298   : > { %v855_v50 = vrot.slane %v854_v40, 1  ;;  %v886_v51 = vrot.slane %v885_v48, 4  ;;  %v818_v46 = vpop.permute.xlu1 %817  ;;  %v902_v29 = vpack.c.bf16 %v870_v60, %v870_v60  ;;  %p1528_p2 = pnand %p1527_p10, %p2058_p1  ;;  %p1535_p8 = por %p1534_p7, %p1533_p4 }
 0x299   : > { %v839_v53 = vmul.f32 %v818_v46, %v791_v14 }
 0x29a   : > { %v887_v55 = vadd.f32 %v886_v51, %v885_v48  ;;  %v856_v58 = vadd.f32 %v855_v50, %v854_v40  ;;  %v929_v2 = vunpack.c.l.b16 %v902_v29  ;;  %p1529_p3 = pneg %p1528_p2 }
 0x29b   : > { %v871_v25 = vsel %vm485_vm0, %v839_v53, 0.0 }
 0x29c   : > { %v872_v59 = vrot.slane %v871_v25, 4  ;;  %v823_v63 = vpop.permute.xlu1 %822  ;;  %v888_v0 = vrot.slane %v887_v55, 2  ;;  %v900_v62 = vpack.c.bf16 %v856_v58, %v856_v58  ;;  %p1536_p11 = pnand %p1535_p8, %p1529_p3 }
 0x29d   : > { %v840_v54 = vmul.f32 %v823_v63, %v792_v49 }
 0x29e   : > { %v873_v6 = vadd.f32 %v872_v59, %v871_v25  ;;  %v889_v12 = vadd.f32 %v888_v0, %v887_v55  ;;  %v927_v19 = vunpack.c.l.b16 %v900_v62  ;;  %v1417_v55 = vld [vmem:[%s2037_s7 + $0x38] sm:$0xff]  }
 0x29f   : > { %v878_v45 = vsel %vm485_vm0, %v840_v54, 0.0  ;;  %1330 = vmatpush3.bf16.msra.mxu0 %v1417_v55 }
 0x2a0   : > { %v874_v4 = vrot.slane %v873_v6, 2  ;;  %v879_v10 = vrot.slane %v878_v45, 4  ;;  %v833_v11 = vpop.permute.xlu1 %832  ;;  %v890_v13 = vrot.slane %v889_v12, 1  ;;  %v935_v7 = vsel %vm934_vm11, %v927_v19, %v926_v22 }
 0x2a1   : > { %v842_v15 = vmul.f32 %v833_v11, %v794_v1  ;;  %v937_v42 = vsel %vm936_vm12, %v928_v41, %v935_v7  ;;  %v1119_v1 = vshrl.u32 %v1118_v8, 7 }
 0x2a2   : > { %v875_v17 = vadd.f32 %v874_v4, %v873_v6  ;;  %v880_v61 = vadd.f32 %v879_v10, %v878_v45  ;;  %v891_v32 = vadd.f32 %v890_v13, %v889_v12  ;;  %v939_v44 = vsel %vm938_vm13, %v929_v2, %v937_v42 }
 0x2a3   : > { %v892_v18 = vsel %vm485_vm0, %v842_v15, 0.0  ;;  %v1121_v6 = vadd.s32 %v1120_v33, %v1119_v1 }
 0x2a4   : > { %v876_v5 = vrot.slane %v875_v17, 1  ;;  %v881_v20 = vrot.slane %v880_v61, 2  ;;  %v893_v21 = vrot.slane %v892_v18, 4  ;;  %v905_v40 = vpack.c.bf16 %v891_v32, %v891_v32 }
 0x2a6   : > { %v877_v26 = vadd.f32 %v876_v5, %v875_v17  ;;  %v882_v27 = vadd.f32 %v881_v20, %v880_v61  ;;  %v894_v28 = vadd.f32 %v893_v21, %v892_v18  ;;  %v932_v51 = vunpack.c.l.b16 %v905_v40 }
 0x2a8   : > { %v903_v30 = vpack.c.bf16 %v877_v26, %v877_v26  ;;  %v883_v31 = vrot.slane %v882_v27, 1  ;;  %v895_v3 = vrot.slane %v894_v28, 2 }
 0x2aa   : > { %v884_v34 = vadd.f32 %v883_v31, %v882_v27  ;;  %v896_v36 = vadd.f32 %v895_v3, %v894_v28  ;;  %v930_v37 = vunpack.c.l.b16 %v903_v30 }
 0x2ac   : > { %v904_v38 = vpack.c.bf16 %v884_v34, %v884_v34  ;;  %v897_v39 = vrot.slane %v896_v36, 1  ;;  %v941_v43 = vsel %vm940_vm14, %v930_v37, %v939_v44 }
 0x2ae   : > { %v931_v14 = vunpack.c.l.b16 %v904_v38  ;;  %v898_v47 = vadd.f32 %v897_v39, %v896_v36 }
 0x2b0   : > { %v943_v48 = vsel %vm942_vm15, %v931_v14, %v941_v43  ;;  %v906_v50 = vpack.c.bf16 %v898_v47, %v898_v47 }
 0x2b1   : > { %v945_v52 = vsel %vm944_vm1, %v932_v51, %v943_v48 }
 0x2b2   : > { %v933_v46 = vunpack.c.l.b16 %v906_v50 }
 0x2b4   : > { %v947_v53 = vsel %vm946_vm2, %v933_v46, %v945_v52 }
 0x2b5   : > { %v948_v49 = vpack.c.b16 %v947_v53, %v947_v53 }
 0x2b7   : > { %1312 = vmatmul.mubr.msk.bf16.vlgmr.msra.gmra.mrb[8].mxu1 %vm485_vm0, %v948_v49  ;;  %vm1122_vm0 = vcmp.lt.s32.totalorder %v1121_v6, 13 }
 0x38a   : > { %v998_v25 = vpop.f32.mrb[8].mxu1 }
 0x38b   : > { %v999_v58 = vadd.f32 %v1259_v57, %v998_v25  ;;  %v1313_v59 = vpop.f32.mrb[9].mxu1 }
 0x38c   : > { %v1001_v63 = vpop.f32.mrb[10].mxu1 }
 0x38d   : > { %v1004_v35 = vmax.f32 %v999_v58, 0.0  ;;  %v1314_v0 = vpop.f32.mrb[11].mxu1 }
 0x38f   : > { %v1005_v54 = vpack.c.bf16 %v1004_v35, %v1004_v35 }
 0x391   : > { %1332 = vmatmul.mubr.bf16.vlgmr.msra.gmra.mrb[0].mxu0 %v1005_v54 }
 0x464   : > { %v1111_v45 = vpop.f32.mrb[0].mxu0 }
 0x465   : > { %v1112_v62 = vadd.f32 %v1263_v9, %v1111_v45  ;;  %v1333_v4 = vpop.f32.mrb[1].mxu0 }
 0x466   : > { %v1114_v10 = vpop.f32.mrb[2].mxu0 }
 0x467   : > { %v1125_v11 = vsel %vm1122_vm0, %v1112_v62, 0.0  ;;  %v1334_v56 = vpop.f32.mrb[3].mxu0 }
 0x468   : > { %1126 = vst [vmem:[%s396_s17] sm:$0xff] %v1125_v11 }
 0x469   : > { %1539 = shalt.err (!%p1536_p11)
}
 0x46a   : > { %s1540_s26 = scalar_lea.hbm %s1988_s11, 128  ;;  %s1544_s29 = scalar_lea.hbm %s2039_s9, 256 }
 0x46b   : > { %p1541_p13 = scmp.ne.s32.totalorder %s1988_s11, %s1540_s26  ;;  %p1545_p6 = scmp.lt.u32.totalorder %s1988_s11, %s2039_s9 }
 0x46c   : > { %p1546_p9 = scmp.lt.u32.totalorder %s1544_s29, %s1540_s26  ;;  %p1548_p10 = scmp.lt.u32.totalorder %s1540_s26, %s1988_s11 }
 0x46d   : > { %p1542_p5 = pnand %p1541_p13, %p2058_p1 }
 0x46e   : > { %p1547_p12 = por %p1546_p9, %p1545_p6 }
 0x46f   : > { %p1543_p0 = pneg %p1542_p5 }
 0x470   : > { %p1549_p2 = por %p1548_p10, %p1547_p12 }
 0x472   : > { %p1550_p3 = pnand %p1549_p2, %p1543_p0 }
 0x474   : > { %1553 = shalt.err (!%p1550_p3)
}
 0x475   : > { %1343 = dma.vmem_to_hbm [thread:$0]  (%p2058_p1), %s1990_s22, 128, %s1988_s11, %s1128_s13  }
 0x476 PF: > { %p1360_p4 = scmp.ge.s32.totalorder %s1596_s12, 2  ;;  %s1153_s17 = sand.u32 1, %s1584_s30  }
 0x477   : > { %p2059_p7 = scmp.ne.s32.totalorder %s2050_s20, 0  ;;  %s1154_s25 = scalar_lea.sflag [#allocation4], %s1153_s17 }
 0x479   : > { %p1353_p8 = pnand %p1360_p4, %p2059_p7 }
 0x47b   : > { %1579 = dma.done.wait (!%p1353_p8), %s1154_s25, 128  }
 0x47c   : > { %1581 = vsyncadd (!%p1353_p8), %s1154_s25, 4294967168  ;;  %s2060_s12 = sld [smem:[#allocation12_spill]]  ;;  %s2061_s23 = sld [smem:[#allocation11_spill]] }
 0x47d   : > { %s2062_s11 = sld [smem:[#allocation13_spill]]  ;;  %s2063_s30 = smov %s1588_s10 }
 0x482   : > { %p21_p11 = scmp.ge.s32.totalorder %s2060_s12, 4   ;;  %s2064_s10 = smov %s2061_s23 }
 0x484   :  { %23 = sbr.rel (!%p21_p11) target bundleno = 5 (0x5), region = 103 }
 0x48b   :  { %1159 = vsyncpa [#allocation3], 1 }
 0x48c   :  { %1161 = vsyncpa [#allocation3 + $0x1], 1 }
 0x48d   :  { %1162 = vsyncpa [#allocation6], 1 }
 0x48e   :  { %1163 = vsyncpa [#allocation4], 1 }
 0x48f   :  { %1165 = vsyncpa [#allocation4 + $0x1], 1 }

// kernel: tpu_custom_call.1
= control target key start
LH: loop header
LB: loop body
LE: loop exit
PB: predicated region body
PF: predicated region fallthrough
CT: control target
= control target key end

     0   :  { %14 = vsyncpa [#allocation3], 0  ;;  %s2030_s0 = inlined_call_operand.vmem [shape: bf16[13,8,32], index: 0, kind: input, shape index: {}]   ;;  %s2031_s1 = inlined_call_operand.vmem [shape: f32[13,8,1], index: 1, kind: input, shape index: {}]   ;;  %s2032_s2 = inlined_call_operand.hbm [shape: bf16[32,128], index: 2, kind: input, shape index: {}]   ;;  %s2033_s3 = inlined_call_operand.vmem [shape: f32[1,128], index: 3, kind: input, shape index: {}]   ;;  %s2034_s4 = inlined_call_operand.vmem [shape: f32[1,128], index: 4, kind: input, shape index: {}]   ;;  %s2035_s5 = inlined_call_operand.hbm [shape: bf16[32,128], index: 5, kind: input, shape index: {}]   ;;  %s2036_s6 = inlined_call_operand.vmem [shape: f32[1,128], index: 6, kind: input, shape index: {}]   ;;  %s2037_s7 = inlined_call_operand.vmem [shape: bf16[128,128], index: 7, kind: input, shape index: {}]   ;;  %s2038_s8 = inlined_call_operand.vmem [shape: f32[1,128], index: 8, kind: input, shape index: {}]   ;;  %s2039_s9 = inlined_call_operand.hbm [shape: f32[16,128], index: 9, kind: output, shape index: {}]  }
   0x1   :  { %15 = vsyncpa [#allocation6], 0 }
   0x2   :  { %16 = vsyncpa [#allocation4], 0 }
   0x3   :  { %18 = vsyncpa [#allocation4 + $0x1], 0  ;;  %s1656_s30 = smov 0   ;;  %s1658_s10 = smov 0  }
   0x4   :  { %s1660_s11 = smov 0   ;;  %s1662_s12 = smov 0  }
   0x5 LB: > { %2046 = sst [smem:[#allocation11_spill]] %s1592_s11  ;;  %s1677_s13 = sadd.s32 4294967295, %s1596_s12   ;;  %s1596_s12 = sphi %s1662_s12, %s2060_s12   ;;  %s1592_s11 = sphi %s1660_s11, %s2062_s11   ;;  %s1588_s10 = sphi %s1658_s10, %s2064_s10   ;;  %s1584_s30 = sphi %s1656_s30, %s2063_s30  }
   0x6   : > { %s1234_s14 = sadd.s32 4294967294, %s1596_s12   ;;  %s1681_s15 = sadd.s32 1, %s1596_s12  }
   0x7   : > { %2047 = sst [smem:[#allocation12_spill]] %s1681_s15  ;;  %s230_s16 = sadd.s32 1, %s1592_s11 }
   0x8   : > { %s227_s17 = ssub.s32 %s1596_s12, %s1681_s15  ;;  %p240_p0 = scmp.ne.s32.totalorder %s1592_s11, %s1588_s10 }
   0x9   : > { %p228_p1 = scmp.eq.s32.totalorder %s227_s17, 0  ;;  %p241_p2 = scmp.eq.s32.totalorder %s1677_s13, 1 }
   0xa   : > { %p246_p3 = scmp.ne.s32.totalorder %s1588_s10, %s1584_s30  ;;  %p247_p4 = scmp.eq.s32.totalorder %s1234_s14, 1 }
   0xb   : > { %s1692_s18 = scalar_select %p228_p1, %s1592_s11, %s230_s16  }
   0xc   : > { %p1694_p5 = por %p241_p2, %p240_p0  ;;  %p1698_p6 = por %p247_p4, %p246_p3 }
   0xd   : > { %2048 = sst [smem:[#allocation13_spill]] %s1692_s18  ;;  %p1235_p7 = scmp.ge.s32.totalorder %s1596_s12, 1 }
   0xe   : > { %s2049_s19 = scalar_select %p1694_p5, 1, 0 }
   0xf   : > { %s2050_s20 = scalar_select %p1698_p6, 1, 0 }
  0x10   : > { %p254_p8 = scmp.lt.s32.totalorder %s1596_s12, 3  ;;  %p2040_p9 = scmp.eq.s32.totalorder %s1677_s13, 0 }
  0x11   : > { %s1598_s22 = smov [#allocation2]   ;;  %s1599_s25 = smov [#allocation5]  }
  0x12   : > { %p1705_p10 = pnand %p1235_p7, %p254_p8  ;;  %s266_s23 = sshll.u32 %s1598_s22, 4  ;;  %s267_s23 = int_to_ptr.vmem [resolvable:$true] %s266_s23 }
  0x13   : > { %s285_s26 = sshll.u32 %s1599_s25, 4  ;;  %s1470_s29 = scalar_lea.hbm %s2032_s2, 256  ;;  %s1717_s26 = int_to_ptr.vmem [resolvable:$true] %s285_s26 }
  0x14   : > { %s2051_s21 = scalar_select %p1705_p10, 1, 0 }
  0x15   : > { %p1345_p11 = pneg %p1705_p10  ;;  %p1471_p13 = scmp.ne.s32.totalorder %s2032_s2, %s1470_s29 }
  0x16   : > { %p1477_p3 = scmp.lt.u32.totalorder %s1470_s29, %s2032_s2 }
  0x17   : > { %p1713_p12 = pnand %p2040_p9, %p1345_p11 }
  0x19   : > { %p1472_p0 = pneg %p1713_p12 }
  0x1b   : > { %p1473_p1 = pnand %p1472_p0, %p1471_p13 }
  0x1d   : > { %p1474_p2 = pneg %p1473_p1 }
  0x1f   : > { %p1479_p4 = pnand %p1477_p3, %p1474_p2 }
  0x21   : > { %1482 = shalt.err (!%p1479_p4)
}
  0x22   : > { %s1483_s25 = scalar_lea.vmem %s267_s23, 256  ;;  %p1491_p9 = scmp.lt.s32.totalorder %s267_s23, %s267_s23 }
  0x23   : > { %p1484_p7 = scmp.ne.s32.totalorder %s267_s23, %s1483_s25  ;;  %p1492_p6 = scmp.lt.s32.totalorder %s1483_s25, %s1483_s25 }
  0x25   : > { %p1486_p8 = pnand %p1484_p7, %p1472_p0  ;;  %p1493_p5 = por %p1492_p6, %p1491_p9 }
  0x27   : > { %p1487_p11 = pneg %p1486_p8 }
  0x29   : > { %p1494_p10 = pnand %p1493_p5, %p1487_p11 }
  0x2b   : > { %1497 = shalt.err (!%p1494_p10)
}
  0x2c   : > { %s1600_s27 = smov 64   ;;  %s1601_s28 = smov 4  }
  0x2d   : > { %1348 = dma.hbm_to_vmem [thread:$0]  (!%p1713_p12), %s2032_s2, 256, %s267_s23, [#allocation3], %s1600_s27, %s1600_s27, %s1601_s28  }
  0x2e   : > { %s1498_s22 = scalar_lea.hbm %s2035_s5, 256 }
  0x2f   : > { %p1499_p13 = scmp.ne.s32.totalorder %s2035_s5, %s1498_s22  ;;  %p1505_p9 = scmp.lt.u32.totalorder %s1498_s22, %s2035_s5 }
  0x31   : > { %p1501_p5 = pnand %p1499_p13, %p1472_p0 }
  0x33   : > { %p1502_p6 = pneg %p1501_p5 }
  0x35   : > { %p1507_p10 = pnand %p1505_p9, %p1502_p6 }
  0x37   : > { %1510 = shalt.err (!%p1507_p10)
}
  0x38   : > { %s1511_s23 = scalar_lea.vmem %s1717_s26, 256  ;;  %p1519_p4 = scmp.lt.s32.totalorder %s1717_s26, %s1717_s26 }
  0x39   : > { %p1512_p1 = scmp.ne.s32.totalorder %s1717_s26, %s1511_s23  ;;  %p1520_p7 = scmp.lt.s32.totalorder %s1511_s23, %s1511_s23 }
  0x3b   : > { %p1514_p2 = pnand %p1512_p1, %p1472_p0  ;;  %p1521_p8 = por %p1520_p7, %p1519_p4 }
  0x3d   : > { %p1515_p3 = pneg %p1514_p2 }
  0x3f   : > { %p1522_p11 = pnand %p1521_p8, %p1515_p3 }
  0x41   : > { %1525 = shalt.err (!%p1522_p11)
}
  0x42   : > { %1351 = dma.hbm_to_vmem [thread:$0]  (!%p1713_p12), %s2035_s5, 256, %s1717_s26, [#allocation6], %s1600_s27, %s1600_s27, %s1601_s28  }
  0x43   : > { %p2053_p13 = scmp.ne.s32.totalorder %s2051_s21, 0 }
  0x44   : > { %p2054_p5 = scmp.eq.s32.totalorder (!%p2053_p13), %s1677_s13, 0 }
  0x45   : > { %344 = sbr.rel (%p2053_p13) target bundleno = 1142 (0x476), region = 56 }
  0x4c   : > { %1571 = dma.done.wait (%p2054_p5), [#allocation3], 256   ;;  %p2055_p0 = pmov %p2054_p5 }
  0x4e   : > { %1573 = vsyncadd (%p2055_p0), [#allocation3], 4294967040  ;;  %p2056_p6 = pmov %p2055_p0 }
  0x4f   : > { %p2057_p9 = pmov %p2055_p0 }
  0x50   : > { %1575 = dma.done.wait (%p2056_p6), [#allocation6], 256  }
  0x51   : > { %1577 = vsyncadd (%p2057_p9), [#allocation6], 4294967040  ;;  %s1777_s18 = sshll.u32 %s1677_s13, 3  ;;  %v1402_v0 = vld [vmem:[#allocation2] sm:$0xff]   ;;  %v1403_v1 = vld [vmem:[#allocation2 + $0x8] sm:$0xff]   ;;  %vm485_vm0 = vcmask 261120  }
  0x52   : > { %p402_p12 = scmp.lt.s32.totalorder %s1777_s18, 12  ;;  %1295 = vmatprep.subr.bf16.mxu1 %v1402_v0  ;;  %v1247_v6 = vld [vmem:[%s2033_s3] ss:$0 sm:$0xff]  ;;  %v1602_v40 = vmov 0   ;;  %vm618_vm2 = vcmask 7168   ;;  %vm1604_vm10 = vmmov 0  }
  0x53   : > { %1296 = vmatpush3.bf16.msra.mxu1 %v1402_v0  ;;  %v1258_v21 = vld [vmem:[%s2034_s4] ss:$0 sm:$0xff]  ;;  %1401 = vset.pattern.permute.xlu1 %v1602_v40  ;;  %vm934_vm11 = vcmask 1041409   ;;  %vm936_vm12 = vcmask 1042434   ;;  %vm938_vm13 = vcmask 1043459   ;;  %vm940_vm14 = vcmask 1044484  }
  0x54   : > { %s1781_s21 = scalar_select %p402_p12, %s1777_s18, 12  ;;  %1297 = vmatprep.subr.bf16.mxu1 %v1403_v1  ;;  %1400 = vset.pattern.permute.xlu0 %v1602_v40  ;;  %vm942_vm15 = vcmask 1045509  }
  0x55   : > { %s394_s27 = sand.u32 1, %s1588_s10   ;;  %s1274_s16 = sshll.u32 %s1677_s13, 7 }
  0x56   : > { %s1244_s24 = sshll.u32 %s1781_s21, 2  ;;  %s1246_s22 = sshll.u32 %s1781_s21, 3 }
  0x57   : > { %s405_s28 = scalar_lea.vmem %s2030_s0, %s1244_s24  ;;  %1298 = vmatpush3.bf16.msra.mxu1 %v1403_v1  ;;  %s1813_s11 = scalar_lea.vmem %s2031_s1, %s1246_s22 }
  0x58   : > { %v1787_v2 = vld [vmem:[%s405_s28] sm:$0xff]   ;;  %v1789_v3 = vld [vmem:[%s405_s28 + $0x8] sm:$0xff]   ;;  %v1791_v4 = vld [vmem:[%s405_s28 + $0x10] sm:$0xff]   ;;  %s1128_s13 = scalar_lea.sflag [#allocation4], %s394_s27  ;;  %p2058_p1 = scmp.ne.s32.totalorder %s2049_s19, 0 }
  0x59   : > { %1299 = vmatprep.mubr.msk.bf16.mxu1 %vm485_vm0, %v1787_v2  ;;  %v1799_v5 = vld [vmem:[%s405_s28 + $0x18] sm:$0xff]   ;;  %v1816_v41 = vld [vmem:[%s1813_s11 + $0x10] sm:$0xff]  ;;  %v1819_v42 = vld [vmem:[%s1813_s11] sm:$0xff]  ;;  %s1242_s28 = sshll.u32 %s394_s27, 3  ;;  %s1605_s15 = smov [#allocation7]  }
  0x5a   : > { %1300 = vmatmul.mubr.msk.bf16.vlgmr.msra.gmra.mrb[0].mxu1 %vm485_vm0, %v1789_v3  ;;  %vm604_vm1 = vcmp.gt.f32.partialorder %v1816_v41, 0.0  ;;  %vm602_vm3 = vcmp.gt.f32.partialorder %v1819_v42, 0.0  ;;  %v1824_v43 = vld [vmem:[%s1813_s11 + $0x18] sm:$0xff]  ;;  %v1827_v45 = vld [vmem:[%s1813_s11 + $0x8] sm:$0xff]  ;;  %v1838_v54 = vld [vmem:[%s1813_s11 + $0x20] sm:$0xff]  ;;  %s396_s17 = scalar_lea.vmem [#allocation7], %s1242_s28 }
  0x5b   : > { %1303 = vmatprep.mubr.msk.bf16.mxu1 %vm485_vm0, %v1791_v4  ;;  %vm605_vm4 = vcmp.gt.f32.partialorder %v1824_v43, 0.0  ;;  %vm603_vm5 = vcmp.gt.f32.partialorder %v1827_v45, 0.0  ;;  %v1849_v61 = vld [vmem:[%s1813_s11 + $0x28] sm:$0xff]  ;;  %vm606_vm6 = vcmp.gt.f32.partialorder %v1838_v54, 0.0  ;;  %s1141_s22 = sshll.u32 %s396_s17, 4  ;;  %s1530_s21 = sshll.u32 %s1605_s15, 4  ;;  %s1990_s22 = int_to_ptr.vmem [resolvable:$true] %s1141_s22  ;;  %s1531_s21 = int_to_ptr.vmem [resolvable:$false] %s1530_s21 }
  0x5c   : > { %vm607_vm7 = vcmp.gt.f32.partialorder %v1849_v61, 0.0  ;;  %s1532_s24 = scalar_lea.vmem %s1531_s21, 256  ;;  %p1533_p4 = scmp.lt.s32.totalorder %s1990_s22, %s1531_s21 }
  0x62   : > { %1304 = vmatmul.mubr.msk.bf16.gmra.mrb[4].mxu1 %vm485_vm0, %v1799_v5 }
 0x12d   : > { %v1301_v7 = vpop.f32.mrb[0].mxu1 }
 0x12e   : > { %v541_v8 = vadd.f32 %v1301_v7, %v1247_v6  ;;  %v532_v9 = vpop.f32.mrb[1].mxu1  ;;  %v1854_v7 = vld [vmem:[%s1813_s11 + $0x30] sm:$0xff] }
 0x12f   : > { %v533_v10 = vadd.f32 %v1247_v6, %v532_v9  ;;  %v1302_v11 = vpop.f32.mrb[2].mxu1  ;;  %vm608_vm8 = vcmp.gt.f32.partialorder %v1854_v7, 0.0 }
 0x130   : > { %1422 = vtanh.f32 %v541_v8  ;;  %v544_v12 = vadd.f32 %v1302_v11, %v1247_v6  ;;  %v535_v13 = vpop.f32.mrb[3].mxu1 }
 0x131   : > { %1424 = vtanh.f32 %v533_v10  ;;  %v536_v14 = vadd.f32 %v1247_v6, %v535_v13 }
 0x132   : > { %1426 = vtanh.f32 %v544_v12 }
 0x133   : > { %1428 = vtanh.f32 %v536_v14  ;;  %v1860_v14 = vld [vmem:[%s1813_s11 + $0x38] sm:$0xff]  ;;  %s1988_s11 = scalar_lea.hbm %s2039_s9, %s1274_s16 }
 0x134   : > { %vm609_vm9 = vcmp.gt.f32.partialorder %v1860_v14, 0.0 }
 0x135   : > { %v1305_v15 = vpop.f32.mrb[4].mxu1 }
 0x136   : > { %v557_v16 = vadd.f32 %v1305_v15, %v1247_v6  ;;  %v548_v17 = vpop.f32.mrb[5].mxu1 }
 0x137   : > { %v549_v18 = vadd.f32 %v1247_v6, %v548_v17  ;;  %v1306_v19 = vpop.f32.mrb[6].mxu1 }
 0x138   : > { %v551_v20 = vpop.f32.mrb[7].mxu1  ;;  %v560_v22 = vadd.f32 %v1306_v19, %v1247_v6 }
 0x139   : > { %1430 = vtanh.f32 %v549_v18  ;;  %v552_v23 = vadd.f32 %v1247_v6, %v551_v20 }
 0x13a   : > { %v1423_v24 = vpop.eup %1422  ;;  %1432 = vtanh.f32 %v557_v16 }
 0x13b   : > { %v1425_v25 = vpop.eup %1424  ;;  %1434 = vtanh.f32 %v552_v23  ;;  %v580_v26 = vmul.f32 %v1423_v24, %v1258_v21 }
 0x13c   : > { %v1427_v27 = vpop.eup %1426  ;;  %v578_v28 = vmul.f32 %v1425_v25, %v1258_v21  ;;  %1436 = vtanh.f32 %v560_v22 }
 0x13d   : > { %v1429_v29 = vpop.eup %1428  ;;  %590 = vadd.xlane.f32.xlu1 %v580_v26  ;;  %v581_v30 = vmul.f32 %v1427_v27, %v1258_v21 }
 0x13e   : > { %586 = vadd.xlane.f32.xlu0 %v578_v28  ;;  %v579_v31 = vmul.f32 %v1429_v29, %v1258_v21 }
 0x141   : > { %592 = vadd.xlane.f32.xlu1 %v581_v30 }
 0x142   : > { %588 = vadd.xlane.f32.xlu0 %v579_v31 }
 0x143   : > { %v1431_v32 = vpop.eup %1430 }
 0x144   : > { %v1433_v33 = vpop.eup %1432  ;;  %v582_v34 = vmul.f32 %v1431_v32, %v1258_v21 }
 0x145   : > { %v1435_v35 = vpop.eup %1434  ;;  %v584_v38 = vmul.f32 %v1433_v33, %v1258_v21 }
 0x146   : > { %594 = vadd.xlane.f32.xlu0 %v582_v34  ;;  %v583_v36 = vmul.f32 %v1435_v35, %v1258_v21  ;;  %v1437_v37 = vpop.eup %1436 }
 0x147   : > { %v585_v39 = vmul.f32 %v1437_v37, %v1258_v21 }
 0x148   : > { %596 = vadd.xlane.f32.xlu1 %v583_v36 }
 0x14a   : > { %598 = vadd.xlane.f32.xlu0 %v584_v38 }
 0x14c   : > { %600 = vadd.xlane.f32.xlu1 %v585_v39 }
 0x1ca   : > { %v591_v44 = vpop.xlane.xlu1 %590 }
 0x1cb   : > { %v612_v46 = vsel %vm604_vm1, %v591_v44, -1e+09  ;;  %v587_v47 = vpop.xlane.xlu0 %586 }
 0x1cc   : > { %v633_v48 = vsel %vm618_vm2, %v612_v46, -inf  ;;  %v610_v49 = vsel %vm602_vm3, %v587_v47, -1e+09 }
 0x1cd   : > { %v634_v50 = vrot.slane %v633_v48, 4  ;;  %v619_v51 = vsel %vm618_vm2, %v610_v49, -inf }
 0x1ce   : > { %v620_v52 = vrot.slane %v619_v51, 4  ;;  %v593_v53 = vpop.xlane.xlu1 %592 }
 0x1cf   : > { %v635_v55 = vmax.f32 %v633_v48, %v634_v50  ;;  %v1842_v56 = vsel %vm605_vm4, %v593_v53, -1e+09  ;;  %v589_v57 = vpop.xlane.xlu0 %588 }
 0x1d0   : > { %v621_v58 = vmax.f32 %v619_v51, %v620_v52  ;;  %v640_v59 = vsel %vm618_vm2, %v1842_v56, -inf  ;;  %v611_v60 = vsel %vm603_vm5, %v589_v57, -1e+09 }
 0x1d1   : > { %v636_v62 = vrot.slane %v635_v55, 2  ;;  %v641_v63 = vrot.slane %v640_v59, 4  ;;  %v626_v0 = vsel %vm618_vm2, %v611_v60, -inf }
 0x1d2   : > { %v622_v1 = vrot.slane %v621_v58, 2  ;;  %v627_v6 = vrot.slane %v626_v0, 4 }
 0x1d3   : > { %v637_v8 = vmax.f32 %v635_v55, %v636_v62  ;;  %v642_v9 = vmax.f32 %v640_v59, %v641_v63  ;;  %v595_v10 = vpop.xlane.xlu0 %594 }
 0x1d4   : > { %v623_v11 = vmax.f32 %v621_v58, %v622_v1  ;;  %v628_v12 = vmax.f32 %v626_v0, %v627_v6  ;;  %v614_v13 = vsel %vm606_vm6, %v595_v10, -1e+09 }
 0x1d5   : > { %v638_v15 = vrot.slane %v637_v8, 1  ;;  %v643_v16 = vrot.slane %v642_v9, 2  ;;  %v647_v17 = vsel %vm618_vm2, %v614_v13, -inf  ;;  %v597_v18 = vpop.xlane.xlu1 %596 }
 0x1d6   : > { %v624_v19 = vrot.slane %v623_v11, 1  ;;  %v629_v20 = vrot.slane %v628_v12, 2  ;;  %v648_v21 = vrot.slane %v647_v17, 4  ;;  %v615_v22 = vsel %vm607_vm7, %v597_v18, -1e+09 }
 0x1d7   : > { %v639_v23 = vmax.f32 %v637_v8, %v638_v15  ;;  %v644_v24 = vmax.f32 %v642_v9, %v643_v16  ;;  %v654_v25 = vsel %vm618_vm2, %v615_v22, -inf  ;;  %v599_v26 = vpop.xlane.xlu0 %598 }
 0x1d8   : > { %v625_v27 = vmax.f32 %v623_v11, %v624_v19  ;;  %v630_v28 = vmax.f32 %v628_v12, %v629_v20  ;;  %v649_v29 = vmax.f32 %v647_v17, %v648_v21  ;;  %v655_v30 = vrot.slane %v654_v25, 4 }
 0x1d9   : > { %v677_v31 = vsub.f32 %v612_v46, %v639_v23  ;;  %v645_v32 = vrot.slane %v644_v24, 1  ;;  %v616_v33 = vsel %vm608_vm8, %v599_v26, -1e+09  ;;  %v601_v34 = vpop.xlane.xlu1 %600 }
 0x1da   : > { %v675_v35 = vsub.f32 %v610_v49, %v625_v27  ;;  %v631_v36 = vrot.slane %v630_v28, 1  ;;  %v650_v37 = vrot.slane %v649_v29, 2  ;;  %v656_v38 = vmax.f32 %v654_v25, %v655_v30 }
 0x1db   : > { %v687_v39 = vmul.f32 1.442695, %v677_v31  ;;  %v646_v40 = vmax.f32 %v644_v24, %v645_v32  ;;  %v661_v44 = vsel %vm618_vm2, %v616_v33, -inf  ;;  %v617_v47 = vsel %vm609_vm9, %v601_v34, -1e+09 }
 0x1dc   : > { %v683_v48 = vmul.f32 1.442695, %v675_v35  ;;  %v632_v50 = vmax.f32 %v630_v28, %v631_v36  ;;  %v651_v51 = vmax.f32 %v649_v29, %v650_v37  ;;  %v657_v46 = vrot.slane %v656_v38, 2 }
 0x1dd   : > { %1438 = vpow2.f32 %v687_v39  ;;  %v678_v52 = vsub.f32 %v1842_v56, %v646_v40  ;;  %v662_v53 = vrot.slane %v661_v44, 4  ;;  %v668_v49 = vsel %vm618_vm2, %v617_v47, -inf }
 0x1de   : > { %1440 = vpow2.f32 %v683_v48  ;;  %v676_v55 = vsub.f32 %v611_v60, %v632_v50  ;;  %v652_v57 = vrot.slane %v651_v51, 1  ;;  %v658_v58 = vmax.f32 %v656_v38, %v657_v46 }
 0x1df   : > { %v689_v59 = vmul.f32 1.442695, %v678_v52  ;;  %v663_v62 = vmax.f32 %v661_v44, %v662_v53  ;;  %v669_v63 = vrot.slane %v668_v49, 4 }
 0x1e0   : > { %v685_v0 = vmul.f32 1.442695, %v676_v55  ;;  %v653_v1 = vmax.f32 %v651_v51, %v652_v57  ;;  %v659_v6 = vrot.slane %v658_v58, 1 }
 0x1e1   : > { %1442 = vpow2.f32 %v689_v59  ;;  %v664_v8 = vrot.slane %v663_v62, 2  ;;  %v670_v9 = vmax.f32 %v668_v49, %v669_v63 }
 0x1e2   : > { %1444 = vpow2.f32 %v685_v0  ;;  %v679_v10 = vsub.f32 %v614_v13, %v653_v1  ;;  %v660_v11 = vmax.f32 %v658_v58, %v659_v6 }
 0x1e3   : > { %v665_v56 = vmax.f32 %v663_v62, %v664_v8  ;;  %v671_v12 = vrot.slane %v670_v9, 2 }
 0x1e4   : > { %v691_v15 = vmul.f32 1.442695, %v679_v10  ;;  %v680_v16 = vsub.f32 %v615_v22, %v660_v11 }
 0x1e5   : > { %v666_v17 = vrot.slane %v665_v56, 1  ;;  %v672_v60 = vmax.f32 %v670_v9, %v671_v12 }
 0x1e6   : > { %1446 = vpow2.f32 %v691_v15  ;;  %v693_v18 = vmul.f32 1.442695, %v680_v16 }
 0x1e7   : > { %v1439_v19 = vpop.eup %1438  ;;  %v667_v20 = vmax.f32 %v665_v56, %v666_v17  ;;  %v673_v21 = vrot.slane %v672_v60, 1 }
 0x1e8   : > { %v1441_v23 = vpop.eup %1440  ;;  %v1877_v24 = vsel %vm604_vm1, %v1439_v19, 0.0  ;;  %1448 = vpow2.f32 %v693_v18  ;;  %vm944_vm1 = vcmask 1046534  }
 0x1e9   : > { %v721_v13 = vsel %vm618_vm2, %v1877_v24, 0.0  ;;  %v1883_v25 = vsel %vm602_vm3, %v1441_v23, 0.0  ;;  %v681_v22 = vsub.f32 %v616_v33, %v667_v20  ;;  %v674_v26 = vmax.f32 %v672_v60, %v673_v21 }
 0x1ea   : > { %v722_v27 = vrot.slane %v721_v13, 4  ;;  %v707_v28 = vsel %vm618_vm2, %v1883_v25, 0.0 }
 0x1eb   : > { %v1443_v29 = vpop.eup %1442  ;;  %v708_v30 = vrot.slane %v707_v28, 4  ;;  %v695_v31 = vmul.f32 1.442695, %v681_v22  ;;  %v682_v41 = vsub.f32 %v617_v47, %v674_v26 }
 0x1ec   : > { %v1445_v32 = vpop.eup %1444  ;;  %v723_v34 = vadd.f32 %v722_v27, %v721_v13  ;;  %v1889_v35 = vsel %vm605_vm4, %v1443_v29, 0.0 }
 0x1ed   : > { %v709_v36 = vadd.f32 %v708_v30, %v707_v28  ;;  %v728_v42 = vsel %vm618_vm2, %v1889_v35, 0.0  ;;  %v1895_v33 = vsel %vm603_vm5, %v1445_v32, 0.0  ;;  %1450 = vpow2.f32 %v695_v31 }
 0x1ee   : > { %v724_v37 = vrot.slane %v723_v34, 2  ;;  %v729_v38 = vrot.slane %v728_v42, 4  ;;  %v714_v39 = vsel %vm618_vm2, %v1895_v33, 0.0  ;;  %v697_v40 = vmul.f32 1.442695, %v682_v41 }
 0x1ef   : > { %v710_v44 = vrot.slane %v709_v36, 2  ;;  %v715_v47 = vrot.slane %v714_v39, 4 }
 0x1f0   : > { %v1447_v43 = vpop.eup %1446  ;;  %v725_v48 = vadd.f32 %v724_v37, %v723_v34  ;;  %v730_v50 = vadd.f32 %v729_v38, %v728_v42  ;;  %1452 = vpow2.f32 %v697_v40 }
 0x1f1   : > { %v711_v51 = vadd.f32 %v710_v44, %v709_v36  ;;  %v716_v46 = vadd.f32 %v715_v47, %v714_v39  ;;  %v1901_v45 = vsel %vm606_vm6, %v1447_v43, 0.0 }
 0x1f2   : > { %v1449_v52 = vpop.eup %1448  ;;  %v726_v53 = vrot.slane %v725_v48, 1  ;;  %v731_v49 = vrot.slane %v730_v50, 2  ;;  %v735_v55 = vsel %vm618_vm2, %v1901_v45, 0.0 }
 0x1f3   : > { %v712_v57 = vrot.slane %v711_v51, 1  ;;  %v717_v58 = vrot.slane %v716_v46, 2  ;;  %v736_v59 = vrot.slane %v735_v55, 4  ;;  %v1907_v62 = vsel %vm607_vm7, %v1449_v52, 0.0 }
 0x1f4   : > { %v727_v63 = vadd.f32 %v726_v53, %v725_v48  ;;  %v732_v0 = vadd.f32 %v731_v49, %v730_v50  ;;  %v742_v54 = vsel %vm618_vm2, %v1907_v62, 0.0 }
 0x1f5   : > { %v713_v1 = vadd.f32 %v712_v57, %v711_v51  ;;  %v718_v6 = vadd.f32 %v717_v58, %v716_v46  ;;  %v737_v8 = vadd.f32 %v736_v59, %v735_v55  ;;  %v743_v9 = vrot.slane %v742_v54, 4 }
 0x1f6   : > { %v765_v10 = vmax.f32 %v727_v63, 1e-20  ;;  %v733_v11 = vrot.slane %v732_v0, 1 }
 0x1f7   : > { %v1451_v56 = vpop.eup %1450  ;;  %v763_v12 = vmax.f32 %v713_v1, 1e-20  ;;  %v719_v15 = vrot.slane %v718_v6, 1  ;;  %v738_v16 = vrot.slane %v737_v8, 2  ;;  %v744_v17 = vadd.f32 %v743_v9, %v742_v54  ;;  %v1409_v9 = vld [vmem:[#allocation5 + $0x8] sm:$0xff]  }
 0x1f8   : > { %1454 = vrcp.f32 %v765_v10  ;;  %v734_v61 = vadd.f32 %v733_v11, %v732_v0  ;;  %v705_v60 = vsel %vm608_vm8, %v1451_v56, 0.0  ;;  %v1412_v10 = vld [vmem:[%s2037_s7 + $0x10] sm:$0xff]   ;;  %v1413_v11 = vld [vmem:[%s2037_s7 + $0x18] sm:$0xff]   ;;  %v1414_v56 = vld [vmem:[%s2037_s7 + $0x20] sm:$0xff]  }
 0x1f9   : > { %1456 = vrcp.f32 %v763_v12  ;;  %v720_v18 = vadd.f32 %v719_v15, %v718_v6  ;;  %v739_v21 = vadd.f32 %v738_v16, %v737_v8  ;;  %v749_v23 = vsel %vm618_vm2, %v705_v60, 0.0  ;;  %v1408_v6 = vld [vmem:[#allocation5] sm:$0xff]   ;;  %v1415_v12 = vld [vmem:[%s2037_s7 + $0x28] sm:$0xff]  }
 0x1fa   : > { %v1453_v19 = vpop.eup %1452  ;;  %v766_v20 = vmax.f32 %v734_v61, 1e-20  ;;  %v745_v22 = vrot.slane %v744_v17, 2  ;;  %v750_v26 = vrot.slane %v749_v23, 4  ;;  %v1603_v8 = vmov 0.0  }
 0x1fb   : > { %v764_v13 = vmax.f32 %v720_v18, 1e-20  ;;  %v706_v27 = vsel %vm609_vm9, %v1453_v19, 0.0  ;;  %v740_v29 = vrot.slane %v739_v21, 1  ;;  %1307 = vmatprep.subr.bf16.mxu1 %v1603_v8  ;;  %1315 = vmatprep.subr.bf16.mxu0 %v1603_v8  ;;  %v787_v15 = vunpack.c.l.bf16 %v1787_v2 }
 0x1fc   : > { %1458 = vrcp.f32 %v766_v20  ;;  %v751_v28 = vadd.f32 %v750_v26, %v749_v23  ;;  %v756_v7 = vsel %vm618_vm2, %v706_v27, 0.0  ;;  %v746_v30 = vadd.f32 %v745_v22, %v744_v17  ;;  %1308 = vmatpush3.bf16.msra.mxu1 %v1408_v6  ;;  %1311 = vmatprep.mubr.msk.bf16.mxu1 %vm1604_vm10, %v1603_v8 }
 0x1fd   : > { %1460 = vrcp.f32 %v764_v13  ;;  %v757_v41 = vrot.slane %v756_v7, 4  ;;  %v741_v42 = vadd.f32 %v740_v29, %v739_v21  ;;  %1309 = vmatprep.subr.bf16.mxu1 %v1603_v8  ;;  %1331 = vmatprep.mubr.msk.bf16.mxu0 %vm1604_vm10, %v1603_v8  ;;  %v789_v16 = vunpack.c.l.bf16 %v1789_v3 }
 0x1fe   : > { %v752_v31 = vrot.slane %v751_v28, 2  ;;  %v747_v39 = vrot.slane %v746_v30, 1  ;;  %v788_v13 = vunpack.c.h.bf16 %v1787_v2  ;;  %vm946_vm2 = vcmask 1047559  }
 0x1ff   : > { %v758_v34 = vadd.f32 %v757_v41, %v756_v7  ;;  %v767_v50 = vmax.f32 %v741_v42, 1e-20 }
 0x200   : > { %v753_v32 = vadd.f32 %v752_v31, %v751_v28  ;;  %v748_v46 = vadd.f32 %v747_v39, %v746_v30  ;;  %1310 = vmatpush3.bf16.msra.mxu1 %v1409_v9 }
 0x201   : > { %v759_v44 = vrot.slane %v758_v34, 2 }
 0x202   : > { %v1455_v36 = vpop.eup %1454  ;;  %v754_v40 = vrot.slane %v753_v32, 1  ;;  %v768_v55 = vmax.f32 %v748_v46, 1e-20 }
 0x203   : > { %v1457_v37 = vpop.eup %1456  ;;  %v781_v38 = vmul.f32 %v1455_v36, %v1877_v24  ;;  %v760_v43 = vadd.f32 %v759_v44, %v758_v34  ;;  %v793_v36 = vunpack.c.l.bf16 %v1799_v5 }
 0x204   : > { %v779_v14 = vmul.f32 %v1457_v37, %v1883_v25  ;;  %v755_v47 = vadd.f32 %v754_v40, %v753_v32 }
 0x205   : > { %807 = vperm.xlu1 %1401, %v781_v38   ;;  %v761_v53 = vrot.slane %v760_v43, 1 }
 0x206   : > { %v1459_v48 = vpop.eup %1458  ;;  %797 = vperm.xlu0 %1400, %v779_v14   ;;  %v769_v52 = vmax.f32 %v755_v47, 1e-20  ;;  %v791_v14 = vunpack.c.l.bf16 %v1791_v4 }
 0x207   : > { %v782_v51 = vmul.f32 %v1459_v48, %v1889_v35  ;;  %v1461_v49 = vpop.eup %1460  ;;  %v762_v57 = vadd.f32 %v761_v53, %v760_v43 }
 0x208   : > { %1462 = vrcp.f32 %v769_v52  ;;  %v780_v24 = vmul.f32 %v1461_v49, %v1895_v33  ;;  %v792_v49 = vunpack.c.h.bf16 %v1791_v4 }
 0x209   : > { %812 = vperm.xlu1 %1401, %v782_v51   ;;  %1464 = vrcp.f32 %v767_v50  ;;  %v770_v25 = vmax.f32 %v762_v57, 1e-20 }
 0x20a   : > { %1466 = vrcp.f32 %v768_v55 }
 0x20b   : > { %1468 = vrcp.f32 %v770_v25 }
 0x20d   : > { %802 = vperm.xlu1 %1401, %v780_v24  }
 0x212   : > { %v1463_v58 = vpop.eup %1462 }
 0x213   : > { %v785_v59 = vmul.f32 %v1463_v58, %v705_v60  ;;  %v1465_v63 = vpop.eup %1464  ;;  %v790_v60 = vunpack.c.h.bf16 %v1789_v3 }
 0x214   : > { %v783_v35 = vmul.f32 %v1465_v63, %v1901_v45  ;;  %v1467_v0 = vpop.eup %1466  ;;  %v1410_v45 = vld [vmem:[%s2037_s7] sm:$0xff]  }
 0x215   : > { %827 = vperm.xlu1 %1401, %v785_v59   ;;  %v784_v54 = vmul.f32 %v1467_v0, %v1907_v62  ;;  %v1469_v1 = vpop.eup %1468  ;;  %1316 = vmatpush3.bf16.msra.mxu0 %v1410_v45  ;;  %v1411_v62 = vld [vmem:[%s2037_s7 + $0x8] sm:$0xff]  }
 0x216   : > { %v786_v33 = vmul.f32 %v1469_v1, %v706_v27  ;;  %1317 = vmatprep.subr.bf16.mxu0 %v1603_v8  ;;  %v794_v1 = vunpack.c.h.bf16 %v1799_v5 }
 0x219   : > { %817 = vperm.xlu1 %1401, %v783_v35   ;;  %1318 = vmatpush3.bf16.msra.mxu0 %v1411_v62 }
 0x21a   : > { %1319 = vmatprep.subr.bf16.mxu0 %v1603_v8 }
 0x21d   : > { %822 = vperm.xlu1 %1401, %v784_v54   ;;  %1320 = vmatpush3.bf16.msra.mxu0 %v1412_v10 }
 0x21e   : > { %1321 = vmatprep.subr.bf16.mxu0 %v1603_v8 }
 0x221   : > { %832 = vperm.xlu1 %1401, %v786_v33   ;;  %1322 = vmatpush3.bf16.msra.mxu0 %v1413_v11 }
 0x222   : > { %1323 = vmatprep.subr.bf16.mxu0 %v1603_v8 }
 0x225   : > { %1324 = vmatpush3.bf16.msra.mxu0 %v1414_v56 }
 0x226   : > { %1325 = vmatprep.subr.bf16.mxu0 %v1603_v8 }
 0x229   : > { %1326 = vmatpush3.bf16.msra.mxu0 %v1415_v12 }
 0x22a   : > { %1327 = vmatprep.subr.bf16.mxu0 %v1603_v8 }
 0x284   : > { %v808_v17 = vpop.permute.xlu1 %807 }
 0x285   : > { %v798_v61 = vpop.permute.xlu0 %797  ;;  %v837_v19 = vmul.f32 %v808_v17, %v789_v16 }
 0x286   : > { %v835_v18 = vmul.f32 %v798_v61, %v787_v15 }
 0x287   : > { %v857_v22 = vsel %vm485_vm0, %v837_v19, 0.0 }
 0x288   : > { %v843_v20 = vsel %vm485_vm0, %v835_v18, 0.0  ;;  %v813_v21 = vpop.permute.xlu1 %812  ;;  %v858_v7 = vrot.slane %v857_v22, 4 }
 0x289   : > { %v838_v23 = vmul.f32 %v813_v21, %v790_v60  ;;  %v844_v26 = vrot.slane %v843_v20, 4 }
 0x28a   : > { %v859_v32 = vadd.f32 %v858_v7, %v857_v22 }
 0x28b   : > { %v864_v28 = vsel %vm485_vm0, %v838_v23, 0.0  ;;  %v845_v30 = vadd.f32 %v844_v26, %v843_v20 }
 0x28c   : > { %v803_v27 = vpop.permute.xlu1 %802  ;;  %v865_v3 = vrot.slane %v864_v28, 4  ;;  %v860_v39 = vrot.slane %v859_v32, 2 }
 0x28d   : > { %v836_v29 = vmul.f32 %v803_v27, %v788_v13  ;;  %v846_v42 = vrot.slane %v845_v30, 2 }
 0x28e   : > { %v866_v37 = vadd.f32 %v865_v3, %v864_v28  ;;  %v861_v52 = vadd.f32 %v860_v39, %v859_v32 }
 0x28f   : > { %v850_v31 = vsel %vm485_vm0, %v836_v29, 0.0  ;;  %v847_v47 = vadd.f32 %v846_v42, %v845_v30 }
 0x290   : > { %v851_v41 = vrot.slane %v850_v31, 4  ;;  %v867_v43 = vrot.slane %v866_v37, 2  ;;  %v862_v35 = vrot.slane %v861_v52, 1 }
 0x291   : > { %v848_v24 = vrot.slane %v847_v47, 1 }
 0x292   : > { %v852_v34 = vadd.f32 %v851_v41, %v850_v31  ;;  %v868_v57 = vadd.f32 %v867_v43, %v866_v37  ;;  %v863_v56 = vadd.f32 %v862_v35, %v861_v52 }
 0x293   : > { %v849_v33 = vadd.f32 %v848_v24, %v847_v47  ;;  %v1416_v24 = vld [vmem:[%s2037_s7 + $0x30] sm:$0xff]  }
 0x294   : > { %v853_v2 = vrot.slane %v852_v34, 2  ;;  %v828_v38 = vpop.permute.xlu1 %827  ;;  %v869_v9 = vrot.slane %v868_v57, 1  ;;  %v901_v23 = vpack.c.bf16 %v863_v56, %v863_v56  ;;  %1328 = vmatpush3.bf16.msra.mxu0 %v1416_v24 }
 0x295   : > { %v841_v44 = vmul.f32 %v828_v38, %v793_v36  ;;  %v899_v16 = vpack.c.bf16 %v849_v33, %v849_v33  ;;  %1329 = vmatprep.subr.bf16.mxu0 %v1603_v8  ;;  %v1118_v8 = vlaneseq  ;;  %v1120_v33 = vstv %s1777_s18  ;;  %s1526_s18 = scalar_lea.vmem %s1990_s22, 128 }
 0x296   : > { %v854_v40 = vadd.f32 %v853_v2, %v852_v34  ;;  %v870_v60 = vadd.f32 %v869_v9, %v868_v57  ;;  %v928_v41 = vunpack.c.l.b16 %v901_v23  ;;  %v1259_v57 = vld [vmem:[%s2036_s6] ss:$0 sm:$0xff]  ;;  %p1527_p10 = scmp.ne.s32.totalorder %s1990_s22, %s1526_s18  ;;  %p1534_p7 = scmp.lt.s32.totalorder %s1532_s24, %s1526_s18 }
 0x297   : > { %v885_v48 = vsel %vm485_vm0, %v841_v44, 0.0  ;;  %v926_v22 = vunpack.c.l.b16 %v899_v16  ;;  %v1263_v9 = vld [vmem:[%s2038_s8] ss:$0 sm:$0xff] }
 0x298   : > { %v855_v50 = vrot.slane %v854_v40, 1  ;;  %v886_v51 = vrot.slane %v885_v48, 4  ;;  %v818_v46 = vpop.permute.xlu1 %817  ;;  %v902_v29 = vpack.c.bf16 %v870_v60, %v870_v60  ;;  %p1528_p2 = pnand %p1527_p10, %p2058_p1  ;;  %p1535_p8 = por %p1534_p7, %p1533_p4 }
 0x299   : > { %v839_v53 = vmul.f32 %v818_v46, %v791_v14 }
 0x29a   : > { %v887_v55 = vadd.f32 %v886_v51, %v885_v48  ;;  %v856_v58 = vadd.f32 %v855_v50, %v854_v40  ;;  %v929_v2 = vunpack.c.l.b16 %v902_v29  ;;  %p1529_p3 = pneg %p1528_p2 }
 0x29b   : > { %v871_v25 = vsel %vm485_vm0, %v839_v53, 0.0 }
 0x29c   : > { %v872_v59 = vrot.slane %v871_v25, 4  ;;  %v823_v63 = vpop.permute.xlu1 %822  ;;  %v888_v0 = vrot.slane %v887_v55, 2  ;;  %v900_v62 = vpack.c.bf16 %v856_v58, %v856_v58  ;;  %p1536_p11 = pnand %p1535_p8, %p1529_p3 }
 0x29d   : > { %v840_v54 = vmul.f32 %v823_v63, %v792_v49 }
 0x29e   : > { %v873_v6 = vadd.f32 %v872_v59, %v871_v25  ;;  %v889_v12 = vadd.f32 %v888_v0, %v887_v55  ;;  %v927_v19 = vunpack.c.l.b16 %v900_v62  ;;  %v1417_v55 = vld [vmem:[%s2037_s7 + $0x38] sm:$0xff]  }
 0x29f   : > { %v878_v45 = vsel %vm485_vm0, %v840_v54, 0.0  ;;  %1330 = vmatpush3.bf16.msra.mxu0 %v1417_v55 }
 0x2a0   : > { %v874_v4 = vrot.slane %v873_v6, 2  ;;  %v879_v10 = vrot.slane %v878_v45, 4  ;;  %v833_v11 = vpop.permute.xlu1 %832  ;;  %v890_v13 = vrot.slane %v889_v12, 1  ;;  %v935_v7 = vsel %vm934_vm11, %v927_v19, %v926_v22 }
 0x2a1   : > { %v842_v15 = vmul.f32 %v833_v11, %v794_v1  ;;  %v937_v42 = vsel %vm936_vm12, %v928_v41, %v935_v7  ;;  %v1119_v1 = vshrl.u32 %v1118_v8, 7 }
 0x2a2   : > { %v875_v17 = vadd.f32 %v874_v4, %v873_v6  ;;  %v880_v61 = vadd.f32 %v879_v10, %v878_v45  ;;  %v891_v32 = vadd.f32 %v890_v13, %v889_v12  ;;  %v939_v44 = vsel %vm938_vm13, %v929_v2, %v937_v42 }
 0x2a3   : > { %v892_v18 = vsel %vm485_vm0, %v842_v15, 0.0  ;;  %v1121_v6 = vadd.s32 %v1120_v33, %v1119_v1 }
 0x2a4   : > { %v876_v5 = vrot.slane %v875_v17, 1  ;;  %v881_v20 = vrot.slane %v880_v61, 2  ;;  %v893_v21 = vrot.slane %v892_v18, 4  ;;  %v905_v40 = vpack.c.bf16 %v891_v32, %v891_v32 }
 0x2a6   : > { %v877_v26 = vadd.f32 %v876_v5, %v875_v17  ;;  %v882_v27 = vadd.f32 %v881_v20, %v880_v61  ;;  %v894_v28 = vadd.f32 %v893_v21, %v892_v18  ;;  %v932_v51 = vunpack.c.l.b16 %v905_v40 }
 0x2a8   : > { %v903_v30 = vpack.c.bf16 %v877_v26, %v877_v26  ;;  %v883_v31 = vrot.slane %v882_v27, 1  ;;  %v895_v3 = vrot.slane %v894_v28, 2 }
 0x2aa   : > { %v884_v34 = vadd.f32 %v883_v31, %v882_v27  ;;  %v896_v36 = vadd.f32 %v895_v3, %v894_v28  ;;  %v930_v37 = vunpack.c.l.b16 %v903_v30 }
 0x2ac   : > { %v904_v38 = vpack.c.bf16 %v884_v34, %v884_v34  ;;  %v897_v39 = vrot.slane %v896_v36, 1  ;;  %v941_v43 = vsel %vm940_vm14, %v930_v37, %v939_v44 }
 0x2ae   : > { %v931_v14 = vunpack.c.l.b16 %v904_v38  ;;  %v898_v47 = vadd.f32 %v897_v39, %v896_v36 }
 0x2b0   : > { %v943_v48 = vsel %vm942_vm15, %v931_v14, %v941_v43  ;;  %v906_v50 = vpack.c.bf16 %v898_v47, %v898_v47 }
 0x2b1   : > { %v945_v52 = vsel %vm944_vm1, %v932_v51, %v943_v48 }
 0x2b2   : > { %v933_v46 = vunpack.c.l.b16 %v906_v50 }
 0x2b4   : > { %v947_v53 = vsel %vm946_vm2, %v933_v46, %v945_v52 }
 0x2b5   : > { %v948_v49 = vpack.c.b16 %v947_v53, %v947_v53 }
 0x2b7   : > { %1312 = vmatmul.mubr.msk.bf16.vlgmr.msra.gmra.mrb[8].mxu1 %vm485_vm0, %v948_v49  ;;  %vm1122_vm0 = vcmp.lt.s32.totalorder %v1121_v6, 13 }
 0x38a   : > { %v998_v25 = vpop.f32.mrb[8].mxu1 }
 0x38b   : > { %v999_v58 = vadd.f32 %v1259_v57, %v998_v25  ;;  %v1313_v59 = vpop.f32.mrb[9].mxu1 }
 0x38c   : > { %v1001_v63 = vpop.f32.mrb[10].mxu1 }
 0x38d   : > { %v1004_v35 = vmax.f32 %v999_v58, 0.0  ;;  %v1314_v0 = vpop.f32.mrb[11].mxu1 }
 0x38f   : > { %v1005_v54 = vpack.c.bf16 %v1004_v35, %v1004_v35 }
 0x391   : > { %1332 = vmatmul.mubr.bf16.vlgmr.msra.gmra.mrb[0].mxu0 %v1005_v54 }
 0x464   : > { %v1111_v45 = vpop.f32.mrb[0].mxu0 }
 0x465   : > { %v1112_v62 = vadd.f32 %v1263_v9, %v1111_v45  ;;  %v1333_v4 = vpop.f32.mrb[1].mxu0 }
 0x466   : > { %v1114_v10 = vpop.f32.mrb[2].mxu0 }
 0x467   : > { %v1125_v11 = vsel %vm1122_vm0, %v1112_v62, 0.0  ;;  %v1334_v56 = vpop.f32.mrb[3].mxu0 }
 0x468   : > { %1126 = vst [vmem:[%s396_s17] sm:$0xff] %v1125_v11 }
 0x469   : > { %1539 = shalt.err (!%p1536_p11)
}
 0x46a   : > { %s1540_s26 = scalar_lea.hbm %s1988_s11, 128  ;;  %s1544_s29 = scalar_lea.hbm %s2039_s9, 256 }
 0x46b   : > { %p1541_p13 = scmp.ne.s32.totalorder %s1988_s11, %s1540_s26  ;;  %p1545_p6 = scmp.lt.u32.totalorder %s1988_s11, %s2039_s9 }
 0x46c   : > { %p1546_p9 = scmp.lt.u32.totalorder %s1544_s29, %s1540_s26  ;;  %p1548_p10 = scmp.lt.u32.totalorder %s1540_s26, %s1988_s11 }
 0x46d   : > { %p1542_p5 = pnand %p1541_p13, %p2058_p1 }
 0x46e   : > { %p1547_p12 = por %p1546_p9, %p1545_p6 }
 0x46f   : > { %p1543_p0 = pneg %p1542_p5 }
 0x470   : > { %p1549_p2 = por %p1548_p10, %p1547_p12 }
 0x472   : > { %p1550_p3 = pnand %p1549_p2, %p1543_p0 }
 0x474   : > { %1553 = shalt.err (!%p1550_p3)
}
 0x475   : > { %1343 = dma.vmem_to_hbm [thread:$0]  (%p2058_p1), %s1990_s22, 128, %s1988_s11, %s1128_s13  }
 0x476 PF: > { %p1360_p4 = scmp.ge.s32.totalorder %s1596_s12, 2  ;;  %s1153_s17 = sand.u32 1, %s1584_s30  }
 0x477   : > { %p2059_p7 = scmp.ne.s32.totalorder %s2050_s20, 0  ;;  %s1154_s25 = scalar_lea.sflag [#allocation4], %s1153_s17 }
 0x479   : > { %p1353_p8 = pnand %p1360_p4, %p2059_p7 }
 0x47b   : > { %1579 = dma.done.wait (!%p1353_p8), %s1154_s25, 128  }
 0x47c   : > { %1581 = vsyncadd (!%p1353_p8), %s1154_s25, 4294967168  ;;  %s2060_s12 = sld [smem:[#allocation12_spill]]  ;;  %s2061_s23 = sld [smem:[#allocation11_spill]] }
 0x47d   : > { %s2062_s11 = sld [smem:[#allocation13_spill]]  ;;  %s2063_s30 = smov %s1588_s10 }
 0x482   : > { %p21_p11 = scmp.ge.s32.totalorder %s2060_s12, 4   ;;  %s2064_s10 = smov %s2061_s23 }
 0x484   :  { %23 = sbr.rel (!%p21_p11) target bundleno = 5 (0x5), region = 103 }
 0x48b   :  { %1159 = vsyncpa [#allocation3], 1 }
 0x48c   :  { %1161 = vsyncpa [#allocation3 + $0x1], 1 }
 0x48d   :  { %1162 = vsyncpa [#allocation6], 1 }
 0x48e   :  { %1163 = vsyncpa [#allocation4], 1 }
 0x48f   :  { %1165 = vsyncpa [#allocation4 + $0x1], 1 }

</bundles_post_ra>
